<compile_context>
chip_gen: v7x
topology: tpu7x:2x2x1
jax: 0.10.0
libtpu: 0.0.40
codegen_flags: <defaults>
</compile_context>

<pallas_src>
import functools

import jax
import jax.numpy as jnp
from jax import lax
from jax.experimental import pallas as pl
from jax.experimental.pallas import tpu as pltpu

EPS = 1e-5  # PyTorch InstanceNorm1d default eps.


# ---------------------------------------------------------------- helpers ----
def _batch_spec(shape):
    """BlockSpec selecting one batch element, batch dim squeezed from the view."""
    zeros = (0,) * len(shape)

    def idx(b):
        return (b,) + zeros

    return pl.BlockSpec((pl.Squeezed(),) + tuple(shape), idx)


def _full_spec(shape):
    """BlockSpec for a batch-shared, full-extent weight array."""
    zeros = (0,) * len(shape)

    def idx(b):
        return zeros

    return pl.BlockSpec(tuple(shape), idx)


def _prelu(x, alpha):
    return jnp.where(x >= 0, x, alpha * x)


def _instance_norm(x, gamma, beta):
    # x: (C, T); per-(sample, channel) stats over T, biased variance, affine.
    # One-pass stats: var = E[x^2] - mean^2 (halves the cross-lane reductions).
    inv_n = 1.0 / x.shape[-1]
    s1 = jnp.sum(x, axis=-1, keepdims=True)
    s2 = jnp.sum(x * x, axis=-1, keepdims=True)
    mean = s1 * inv_n
    var = s2 * inv_n - mean * mean
    return (x - mean) * lax.rsqrt(var + EPS) * gamma + beta


def _shifted_stack(y, kd1, dil, is_causal, seq_len):
    """Build the (kd1*cd1, T) operand of the merged dilated conv.

    Each tap k needs y shifted right by s_k = pad_l - k*dil (zero fill).
    Shifts are static, so pltpu.roll + a static zero mask keep everything
    lane-aligned (no pad buffer, no masked stores).
    """
    total = (kd1 - 1) * dil
    pad_l = total if is_causal else total // 2
    t_ids = lax.broadcasted_iota(jnp.int32, y.shape, 1)
    parts = []
    for k in range(kd1):
        s = pad_l - k * dil  # static; may be negative in non-causal mode
        if s == 0:
            parts.append(y)
        elif abs(s) >= seq_len:
            parts.append(jnp.zeros_like(y))
        else:
            yk = pltpu.roll(y, shift=s % seq_len, axis=1)
            if s > 0:
                yk = jnp.where(t_ids >= s, yk, 0.0)
            else:
                yk = jnp.where(t_ids < seq_len + s, yk, 0.0)
            parts.append(yk)
    return jnp.concatenate(parts, axis=0)


# ------------------------------------------------ fused GazeBlock kernel -----
def _gaze_block_kernel(feat_ref, pre_ref,
                       w_in_f_ref, w_in_p_ref, b_in_ref,
                       w_tin_ref, a1_ref, g1_ref, be1_ref, w_d_ref,
                       a2_ref, g2_ref, be2_ref, w_tout_ref,
                       w_lin_ref, b_lin_ref, o_ref,
                       *, dilations, kd1, is_causal, seq_len, d_feat,
                       n_branch):
    # ---- gated input 1x1 conv: main & gate stacked along output rows -------
    feat = feat_ref[...]                                    # (d_feat, T)
    pre = pre_ref[...]                                      # (2F,     T)
    mg = (jnp.dot(w_in_f_ref[...], feat, preferred_element_type=jnp.float32)
          + jnp.dot(w_in_p_ref[...], pre, preferred_element_type=jnp.float32)
          + b_in_ref[...])                                  # (2*d_feat, T)
    x0 = mg[:d_feat, :] * jax.nn.sigmoid(mg[d_feat:, :])    # (d_feat, T)

    # ---- SqueezedTCM chains (fully unrolled; r / i branches independent) ---
    branch_out = []
    for br in range(n_branch):
        x = x0
        for i, dil in enumerate(dilations):
            resi = x
            # in_conv: 1x1, no bias
            y = jnp.dot(w_tin_ref[br, i], x,
                        preferred_element_type=jnp.float32)
            # d_conv: PReLU -> InstanceNorm -> dilated conv (merged taps)
            y = _prelu(y, a1_ref[br, i])
            y = _instance_norm(y, g1_ref[br, i], be1_ref[br, i])
            y_stack = _shifted_stack(y, kd1, dil, is_causal, seq_len)
            y = jnp.dot(w_d_ref[br, i], y_stack,            # (cd1, kd1*cd1)@(kd1*cd1, T)
                        preferred_element_type=jnp.float32)
            # out_conv: PReLU -> InstanceNorm -> 1x1, no bias
            y = _prelu(y, a2_ref[br, i])
            y = _instance_norm(y, g2_ref[br, i], be2_ref[br, i])
            y = jnp.dot(w_tout_ref[br, i], y,
                        preferred_element_type=jnp.float32)
            x = y + resi
        branch_out.append(x)
    x_r = branch_out[0]
    x_i = branch_out[-1]        # same tensor as x_r when is_squeezed

    # ---- output 1x1 convs, written directly as the stacked (2, F, T) block -
    o_ref[0] = (jnp.dot(w_lin_ref[0], x_r, preferred_element_type=jnp.float32)
                + b_lin_ref[0]).astype(o_ref.dtype)
    o_ref[1] = (jnp.dot(w_lin_ref[1], x_i, preferred_element_type=jnp.float32)
                + b_lin_ref[1]).astype(o_ref.dtype)


# --------------------------------------------------------- full forward ------
def gaze_block_forward(params, feat_x, pre_x, *, kd1, dilas, p, is_causal,
                       is_squeezed, norm_type):
    # TODO(synk): only norm_type='IN' (InstanceNorm1d, affine) is implemented;
    # the 'BN' path needs batch/running statistics and is not translated.
    if norm_type != 'IN':
        raise NotImplementedError("only norm_type='IN' is implemented")
    B, two, F, T = pre_x.shape
    d_feat = feat_x.shape[1]
    two_f = two * F
    pre_flat = pre_x.reshape(B, two_f, T)          # pure data movement -> XLA

    # Fuse the channel concat into the matmul by splitting the weight, and
    # stack main/gate along the output rows (one wider matmul instead of two).
    w_stack = jnp.concatenate([params['in_main_w'], params['in_gate_w']], 0)
    b_stack = jnp.concatenate([params['in_main_b'], params['in_gate_b']], 0)
    w_in_f = w_stack[:, :d_feat]                   # (2*d_feat, d_feat)
    w_in_p = w_stack[:, d_feat:]                   # (2*d_feat, 2F)
    b_in = b_stack.reshape(2 * d_feat, 1)

    if is_squeezed:
        branches = [params['tcm_ri']]
    else:
        branches = [params['tcm_r'], params['tcm_i']]
    nb = len(branches)

    def stk(key):
        return jnp.stack([bd[key] for bd in branches], axis=0)

    w_tin = stk('w_in')                            # (nb, n_tcm, cd1, d_feat)
    a1, g1, be1 = stk('alpha1'), stk('gamma1'), stk('beta1')
    a2, g2, be2 = stk('alpha2'), stk('gamma2'), stk('beta2')
    w_tout = stk('w_out')                          # (nb, n_tcm, d_feat, cd1)
    wd_raw = stk('w_d')                            # (nb, n_tcm, kd1, cd1, cd1)
    _, n_tcm, _, cd1, _ = wd_raw.shape
    # Merge the kd1 taps into the contraction dim: (nb, n_tcm, cd1, kd1*cd1)
    w_d = jnp.transpose(wd_raw, (0, 1, 3, 2, 4)).reshape(nb, n_tcm, cd1,
                                                         kd1 * cd1)

    w_lin = jnp.stack([params['lin_r_w'], params['lin_i_w']], 0)   # (2, F, d_feat)
    b_lin = jnp.stack([params['lin_r_b'], params['lin_i_b']], 0).reshape(2, F, 1)

    dilations = tuple(dilas) * p
    assert len(dilations) == n_tcm

    kernel = functools.partial(
        _gaze_block_kernel, dilations=dilations, kd1=kd1, is_causal=is_causal,
        seq_len=T, d_feat=d_feat, n_branch=nb)

    weights = [w_in_f, w_in_p, b_in, w_tin, a1, g1, be1, w_d, a2, g2, be2,
               w_tout, w_lin, b_lin]

    # Advisory cost estimate (flops = 2 * MACs).
    macs = B * T * (2 * d_feat * (d_feat + two_f)
                    + nb * n_tcm * cd1 * (d_feat + kd1 * cd1 + d_feat)
                    + 2 * F * d_feat)
    weight_bytes = sum(int(w.size) * 4 for w in weights)
    act_bytes = 4 * B * T * (d_feat + two_f + 2 * F)
    cost = pl.CostEstimate(flops=int(2 * macs),
                           transcendentals=int(B * T * d_feat
                                               + B * nb * n_tcm * 2 * cd1),
                           bytes_accessed=int(weight_bytes + act_bytes))

    return pl.pallas_call(
        kernel,
        out_shape=jax.ShapeDtypeStruct((B, 2, F, T), feat_x.dtype),
        grid_spec=pltpu.PrefetchScalarGridSpec(
            num_scalar_prefetch=0,
            grid=(B,),
            in_specs=[_batch_spec((d_feat, T)),
                      _batch_spec((two_f, T))]
                     + [_full_spec(w.shape) for w in weights],
            out_specs=pl.BlockSpec((pl.Squeezed(), 2, F, T),
                                   lambda b: (b, 0, 0, 0)),
        ),
        compiler_params=pltpu.CompilerParams(
            dimension_semantics=("parallel",)),
        cost_estimate=cost,
    )(feat_x, pre_flat, *weights)


# ------------------------------------------------------------ parameters -----
def init_params(key, *, kd1, cd1, d_feat, p, dilas, fft_num, is_squeezed):
    F = fft_num // 2 + 1
    ci = 2 * F + d_feat
    n_tcm = p * len(dilas)
    ks = jax.random.split(key, 12)

    def w(k, shape, scale=0.1):
        return (scale * jax.random.normal(k, shape)).astype(jnp.float32)

    def branch(k):
        kk = jax.random.split(k, 3)
        return {
            'w_in': w(kk[0], (n_tcm, cd1, d_feat)),
            'alpha1': jnp.full((n_tcm, cd1, 1), 0.25, jnp.float32),
            'gamma1': jnp.ones((n_tcm, cd1, 1), jnp.float32),
            'beta1': jnp.zeros((n_tcm, cd1, 1), jnp.float32),
            # stored k-major: (n_tcm, kd1, cd1_out, cd1_in)
            'w_d': w(kk[1], (n_tcm, kd1, cd1, cd1)),
            'alpha2': jnp.full((n_tcm, cd1, 1), 0.25, jnp.float32),
            'gamma2': jnp.ones((n_tcm, cd1, 1), jnp.float32),
            'beta2': jnp.zeros((n_tcm, cd1, 1), jnp.float32),
            'w_out': w(kk[2], (n_tcm, d_feat, cd1)),
        }

    params = {
        'in_main_w': w(ks[0], (d_feat, ci)),
        'in_main_b': w(ks[1], (d_feat,)),
        'in_gate_w': w(ks[2], (d_feat, ci)),
        'in_gate_b': w(ks[3], (d_feat,)),
        'lin_r_w': w(ks[4], (F, d_feat)),
        'lin_r_b': w(ks[5], (F,)),
        'lin_i_w': w(ks[6], (F, d_feat)),
        'lin_i_b': w(ks[7], (F,)),
    }
    if is_squeezed:
        params['tcm_ri'] = branch(ks[8])
    else:
        params['tcm_r'] = branch(ks[8])
        params['tcm_i'] = branch(ks[9])
    return params


# ------------------------------------------------------- pure-JAX reference --
def reference_forward(params, feat_x, pre_x, *, kd1, dilas, p, is_causal,
                      is_squeezed):
    HIGH = lax.Precision.HIGHEST
    B, two, F, T = pre_x.shape
    inpt = jnp.concatenate([feat_x, pre_x.reshape(B, two * F, T)], axis=1)

    def conv1x1(x, wmat, bias=None):
        y = jnp.einsum('oc,bct->bot', wmat, x, precision=HIGH)
        if bias is not None:
            y = y + bias[None, :, None]
        return y

    def prelu(x, a):
        return jnp.where(x >= 0, x, a[None] * x)

    def in_norm(x, g, b):
        mean = jnp.mean(x, axis=-1, keepdims=True)
        var = jnp.mean((x - mean) ** 2, axis=-1, keepdims=True)
        return (x - mean) / jnp.sqrt(var + EPS) * g[None] + b[None]

    x = (conv1x1(inpt, params['in_main_w'], params['in_main_b'])
         * jax.nn.sigmoid(conv1x1(inpt, params['in_gate_w'],
                                  params['in_gate_b'])))
    dilations = tuple(dilas) * p

    def tcm_branch(x, bp):
        for i, dil in enumerate(dilations):
            resi = x
            y = jnp.einsum('oc,bct->bot', bp['w_in'][i], x, precision=HIGH)
            y = prelu(y, bp['alpha1'][i])
            y = in_norm(y, bp['gamma1'][i], bp['beta1'][i])
            total = (kd1 - 1) * dil
            pads = (total, 0) if is_causal else (total // 2, total // 2)
            yp = jnp.pad(y, ((0, 0), (0, 0), pads))
            acc = 0.
            for k in range(kd1):
                acc = acc + jnp.einsum('oc,bct->bot', bp['w_d'][i, k],
                                       yp[:, :, k * dil:k * dil + T],
                                       precision=HIGH)
            y = prelu(acc, bp['alpha2'][i])
            y = in_norm(y, bp['gamma2'][i], bp['beta2'][i])
            y = jnp.einsum('oc,bct->bot', bp['w_out'][i], y, precision=HIGH)
            x = y + resi
        return x

    if is_squeezed:
        x_r = x_i = tcm_branch(x, params['tcm_ri'])
    else:
        x_r = tcm_branch(x, params['tcm_r'])
        x_i = tcm_branch(x, params['tcm_i'])
    out_r = conv1x1(x_r, params['lin_r_w'], params['lin_r_b'])
    out_i = conv1x1(x_i, params['lin_i_w'], params['lin_i_b'])
    return jnp.stack([out_r, out_i], axis=1)


# ------------------------------------------------------------------- main ----
if __name__ == "__main__":
    kd1, cd1, d_feat, p = 3, 16, 32, 1
    dilas = [1, 2]
    fft_num = 64
    is_causal, is_squeezed, norm_type = True, False, 'IN'
    B, T = 2, 128                       # T multiple of 128 -> lane-dense
    F = fft_num // 2 + 1

    key = jax.random.PRNGKey(0)
    k_param, k_feat, k_pre = jax.random.split(key, 3)
    params = init_params(k_param, kd1=kd1, cd1=cd1, d_feat=d_feat, p=p,
                         dilas=dilas, fft_num=fft_num, is_squeezed=is_squeezed)
    feat_x = jax.random.normal(k_feat, (B, d_feat, T), dtype=jnp.float32)
    pre_x = jax.random.normal(k_pre, (B, 2, F, T), dtype=jnp.float32)

    out = jax.block_until_ready(
        gaze_block_forward(params, feat_x, pre_x, kd1=kd1, dilas=dilas, p=p,
                           is_causal=is_causal, is_squeezed=is_squeezed,
                           norm_type=norm_type))
    assert out.shape == (B, 2, F, T)

    ref = reference_forward(params, feat_x, pre_x, kd1=kd1, dilas=dilas, p=p,
                            is_causal=is_causal, is_squeezed=is_squeezed)
    max_err = float(jnp.max(jnp.abs(out - ref)))
    assert jnp.allclose(out, ref, atol=5e-2, rtol=5e-2), max_err

    print("KERNEL_OK")
</pallas_src>

<mosaic_0001>
module attributes {stable_mosaic.version = 11 : i64} {
  func.func @_gaze_block_kernel(%arg0: i32, %arg1: memref<1x32x128xf32, #tpu.memory_space<vmem>>, %arg2: memref<1x66x128xf32, #tpu.memory_space<vmem>>, %arg3: memref<64x32xf32, #tpu.memory_space<vmem>>, %arg4: memref<64x66xf32, #tpu.memory_space<vmem>>, %arg5: memref<64x1xf32, #tpu.memory_space<vmem>>, %arg6: memref<2x2x16x32xf32, #tpu.memory_space<vmem>>, %arg7: memref<2x2x16x1xf32, #tpu.memory_space<vmem>>, %arg8: memref<2x2x16x1xf32, #tpu.memory_space<vmem>>, %arg9: memref<2x2x16x1xf32, #tpu.memory_space<vmem>>, %arg10: memref<2x2x16x48xf32, #tpu.memory_space<vmem>>, %arg11: memref<2x2x16x1xf32, #tpu.memory_space<vmem>>, %arg12: memref<2x2x16x1xf32, #tpu.memory_space<vmem>>, %arg13: memref<2x2x16x1xf32, #tpu.memory_space<vmem>>, %arg14: memref<2x2x32x16xf32, #tpu.memory_space<vmem>>, %arg15: memref<2x33x32xf32, #tpu.memory_space<vmem>>, %arg16: memref<2x33x1xf32, #tpu.memory_space<vmem>>, %arg17: memref<1x2x33x128xf32, #tpu.memory_space<vmem>>) attributes {dimension_semantics = [#tpu.dimension_semantics<parallel>], iteration_bounds = array<i64: 2>, scalar_prefetch = 0 : i64, scratch_operands = 0 : i64, tpu.core_type = #tpu.core_type<tc>, window_params = [{transform_indices = @transform_0, window_bounds = array<i64: 1, 32, 128>}, {transform_indices = @transform_1, window_bounds = array<i64: 1, 66, 128>}, {pipeline_mode = #tpu.pipeline_mode<synchronous>, transform_indices = @transform_2, window_bounds = array<i64: 64, 32>}, {pipeline_mode = #tpu.pipeline_mode<synchronous>, transform_indices = @transform_3, window_bounds = array<i64: 64, 66>}, {pipeline_mode = #tpu.pipeline_mode<synchronous>, transform_indices = @transform_4, window_bounds = array<i64: 64, 1>}, {pipeline_mode = #tpu.pipeline_mode<synchronous>, transform_indices = @transform_5, window_bounds = array<i64: 2, 2, 16, 32>}, {pipeline_mode = #tpu.pipeline_mode<synchronous>, transform_indices = @transform_6, window_bounds = array<i64: 2, 2, 16, 1>}, {pipeline_mode = #tpu.pipeline_mode<synchronous>, transform_indices = @transform_7, window_bounds = array<i64: 2, 2, 16, 1>}, {pipeline_mode = #tpu.pipeline_mode<synchronous>, transform_indices = @transform_8, window_bounds = array<i64: 2, 2, 16, 1>}, {pipeline_mode = #tpu.pipeline_mode<synchronous>, transform_indices = @transform_9, window_bounds = array<i64: 2, 2, 16, 48>}, {pipeline_mode = #tpu.pipeline_mode<synchronous>, transform_indices = @transform_10, window_bounds = array<i64: 2, 2, 16, 1>}, {pipeline_mode = #tpu.pipeline_mode<synchronous>, transform_indices = @transform_11, window_bounds = array<i64: 2, 2, 16, 1>}, {pipeline_mode = #tpu.pipeline_mode<synchronous>, transform_indices = @transform_12, window_bounds = array<i64: 2, 2, 16, 1>}, {pipeline_mode = #tpu.pipeline_mode<synchronous>, transform_indices = @transform_13, window_bounds = array<i64: 2, 2, 32, 16>}, {pipeline_mode = #tpu.pipeline_mode<synchronous>, transform_indices = @transform_14, window_bounds = array<i64: 2, 33, 32>}, {pipeline_mode = #tpu.pipeline_mode<synchronous>, transform_indices = @transform_15, window_bounds = array<i64: 2, 33, 1>}, {transform_indices = @transform_16, window_bounds = array<i64: 1, 2, 33, 128>}]} {
    %c0 = arith.constant 0 : index
    %c0_0 = arith.constant 0 : index
    %c0_1 = arith.constant 0 : index
    %0 = vector.load %arg1[%c0, %c0_0, %c0_1] : memref<1x32x128xf32, #tpu.memory_space<vmem>>, vector<1x32x128xf32>
    %1 = vector.shape_cast %0 : vector<1x32x128xf32> to vector<32x128xf32>
    %c0_2 = arith.constant 0 : index
    %c0_3 = arith.constant 0 : index
    %c0_4 = arith.constant 0 : index
    %2 = vector.load %arg2[%c0_2, %c0_3, %c0_4] : memref<1x66x128xf32, #tpu.memory_space<vmem>>, vector<1x66x128xf32>
    %3 = vector.shape_cast %2 : vector<1x66x128xf32> to vector<66x128xf32>
    %c0_5 = arith.constant 0 : index
    %c0_6 = arith.constant 0 : index
    %4 = vector.load %arg3[%c0_5, %c0_6] : memref<64x32xf32, #tpu.memory_space<vmem>>, vector<64x32xf32>
    %cst = arith.constant dense<0.000000e+00> : vector<64x128xf32>
    %5 = tpu.matmul %4, %1, %cst {dimension_numbers = #tpu.dot_dimension_numbers<[1], [0], [0], [1], [0, 0, 1, 1], [], []>} : vector<64x32xf32>, vector<32x128xf32>, vector<64x128xf32> -> vector<64x128xf32>
    %c0_7 = arith.constant 0 : index
    %c0_8 = arith.constant 0 : index
    %6 = vector.load %arg4[%c0_7, %c0_8] : memref<64x66xf32, #tpu.memory_space<vmem>>, vector<64x66xf32>
    %cst_9 = arith.constant dense<0.000000e+00> : vector<64x128xf32>
    %7 = tpu.matmul %6, %3, %cst_9 {dimension_numbers = #tpu.dot_dimension_numbers<[1], [0], [0], [1], [0, 0, 1, 1], [], []>} : vector<64x66xf32>, vector<66x128xf32>, vector<64x128xf32> -> vector<64x128xf32>
    %8 = arith.addf %5, %7 : vector<64x128xf32>
    %c0_10 = arith.constant 0 : index
    %c0_11 = arith.constant 0 : index
    %9 = vector.load %arg5[%c0_10, %c0_11] : memref<64x1xf32, #tpu.memory_space<vmem>>, vector<64x1xf32>
    %10 = vector.broadcast %9 : vector<64x1xf32> to vector<64x128xf32>
    %11 = arith.addf %8, %10 : vector<64x128xf32>
    %12 = vector.extract_strided_slice %11 {offsets = [0, 0], sizes = [32, 128], strides = [1, 1]} : vector<64x128xf32> to vector<32x128xf32>
    %13 = vector.extract_strided_slice %11 {offsets = [32, 0], sizes = [32, 128], strides = [1, 1]} : vector<64x128xf32> to vector<32x128xf32>
    %14 = arith.negf %13 : vector<32x128xf32>
    %15 = math.exp %14 : vector<32x128xf32>
    %cst_12 = arith.constant 1.000000e+00 : f32
    %16 = vector.broadcast %cst_12 : f32 to vector<32x128xf32>
    %17 = arith.addf %16, %15 : vector<32x128xf32>
    %18 = arith.divf %16, %17 : vector<32x128xf32>
    %19 = arith.mulf %12, %18 : vector<32x128xf32>
    %c0_13 = arith.constant 0 : index
    %c0_14 = arith.constant 0 : index
    %c0_15 = arith.constant 0 : index
    %c0_16 = arith.constant 0 : index
    %20 = vector.load %arg6[%c0_13, %c0_14, %c0_15, %c0_16] : memref<2x2x16x32xf32, #tpu.memory_space<vmem>>, vector<1x1x16x32xf32>
    %21 = vector.shape_cast %20 : vector<1x1x16x32xf32> to vector<16x32xf32>
    %cst_17 = arith.constant dense<0.000000e+00> : vector<16x128xf32>
    %22 = tpu.matmul %21, %19, %cst_17 {dimension_numbers = #tpu.dot_dimension_numbers<[1], [0], [0], [1], [0, 0, 1, 1], [], []>} : vector<16x32xf32>, vector<32x128xf32>, vector<16x128xf32> -> vector<16x128xf32>
    %c0_18 = arith.constant 0 : index
    %c0_19 = arith.constant 0 : index
    %c0_20 = arith.constant 0 : index
    %c0_21 = arith.constant 0 : index
    %23 = vector.load %arg7[%c0_18, %c0_19, %c0_20, %c0_21] : memref<2x2x16x1xf32, #tpu.memory_space<vmem>>, vector<1x1x16x1xf32>
    %24 = vector.shape_cast %23 : vector<1x1x16x1xf32> to vector<16x1xf32>
    %cst_22 = arith.constant 0.000000e+00 : f32
    %25 = vector.broadcast %cst_22 : f32 to vector<16x128xf32>
    %26 = arith.cmpf oge, %22, %25 : vector<16x128xf32>
    %27 = vector.broadcast %24 : vector<16x1xf32> to vector<16x128xf32>
    %28 = arith.mulf %27, %22 : vector<16x128xf32>
    %29 = arith.select %26, %22, %28 : vector<16x128xi1>, vector<16x128xf32>
    %c0_23 = arith.constant 0 : index
    %c0_24 = arith.constant 0 : index
    %c0_25 = arith.constant 0 : index
    %c0_26 = arith.constant 0 : index
    %30 = vector.load %arg8[%c0_23, %c0_24, %c0_25, %c0_26] : memref<2x2x16x1xf32, #tpu.memory_space<vmem>>, vector<1x1x16x1xf32>
    %31 = vector.shape_cast %30 : vector<1x1x16x1xf32> to vector<16x1xf32>
    %c0_27 = arith.constant 0 : index
    %c0_28 = arith.constant 0 : index
    %c0_29 = arith.constant 0 : index
    %c0_30 = arith.constant 0 : index
    %32 = vector.load %arg9[%c0_27, %c0_28, %c0_29, %c0_30] : memref<2x2x16x1xf32, #tpu.memory_space<vmem>>, vector<1x1x16x1xf32>
    %33 = vector.shape_cast %32 : vector<1x1x16x1xf32> to vector<16x1xf32>
    %cst_31 = arith.constant dense<0.000000e+00> : vector<16xf32>
    %34 = vector.multi_reduction <add>, %29, %cst_31 [1] : vector<16x128xf32> to vector<16xf32>
    %35 = vector.shape_cast %34 : vector<16xf32> to vector<16x1xf32>
    %36 = arith.mulf %29, %29 : vector<16x128xf32>
    %cst_32 = arith.constant dense<0.000000e+00> : vector<16xf32>
    %37 = vector.multi_reduction <add>, %36, %cst_32 [1] : vector<16x128xf32> to vector<16xf32>
    %38 = vector.shape_cast %37 : vector<16xf32> to vector<16x1xf32>
    %cst_33 = arith.constant 7.812500e-03 : f32
    %39 = vector.broadcast %cst_33 : f32 to vector<16x1xf32>
    %40 = arith.mulf %35, %39 : vector<16x1xf32>
    %cst_34 = arith.constant 7.812500e-03 : f32
    %41 = vector.broadcast %cst_34 : f32 to vector<16x1xf32>
    %42 = arith.mulf %38, %41 : vector<16x1xf32>
    %43 = arith.mulf %40, %40 : vector<16x1xf32>
    %44 = arith.subf %42, %43 : vector<16x1xf32>
    %45 = vector.broadcast %40 : vector<16x1xf32> to vector<16x128xf32>
    %46 = arith.subf %29, %45 : vector<16x128xf32>
    %cst_35 = arith.constant 9.99999974E-6 : f32
    %47 = vector.broadcast %cst_35 : f32 to vector<16x1xf32>
    %48 = arith.addf %44, %47 : vector<16x1xf32>
    %49 = math.rsqrt %48 : vector<16x1xf32>
    %50 = vector.broadcast %49 : vector<16x1xf32> to vector<16x128xf32>
    %51 = arith.mulf %46, %50 : vector<16x128xf32>
    %52 = vector.broadcast %31 : vector<16x1xf32> to vector<16x128xf32>
    %53 = arith.mulf %51, %52 : vector<16x128xf32>
    %54 = vector.broadcast %33 : vector<16x1xf32> to vector<16x128xf32>
    %55 = arith.addf %53, %54 : vector<16x128xf32>
    %56 = tpu.iota {dimensions = array<i32: 1>} : vector<16x128xi32>
    %c2_i32 = arith.constant 2 : i32
    %57 = tpu.dynamic_rotate %55 by %c2_i32 dim 1 : vector<16x128xf32>, i32 -> vector<16x128xf32>
    %c2_i32_36 = arith.constant 2 : i32
    %58 = vector.broadcast %c2_i32_36 : i32 to vector<16x128xi32>
    %59 = arith.cmpi sge, %56, %58 : vector<16x128xi32>
    %cst_37 = arith.constant 0.000000e+00 : f32
    %60 = vector.broadcast %cst_37 : f32 to vector<16x128xf32>
    %61 = arith.select %59, %57, %60 : vector<16x128xi1>, vector<16x128xf32>
    %c1_i32 = arith.constant 1 : i32
    %62 = tpu.dynamic_rotate %55 by %c1_i32 dim 1 : vector<16x128xf32>, i32 -> vector<16x128xf32>
    %c1_i32_38 = arith.constant 1 : i32
    %63 = vector.broadcast %c1_i32_38 : i32 to vector<16x128xi32>
    %64 = arith.cmpi sge, %56, %63 : vector<16x128xi32>
    %cst_39 = arith.constant 0.000000e+00 : f32
    %65 = vector.broadcast %cst_39 : f32 to vector<16x128xf32>
    %66 = arith.select %64, %62, %65 : vector<16x128xi1>, vector<16x128xf32>
    %67 = tpu.concatenate %61, %66, %55 in 0 : vector<16x128xf32>, vector<16x128xf32>, vector<16x128xf32> -> vector<48x128xf32>
    %c0_40 = arith.constant 0 : index
    %c0_41 = arith.constant 0 : index
    %c0_42 = arith.constant 0 : index
    %c0_43 = arith.constant 0 : index
    %68 = vector.load %arg10[%c0_40, %c0_41, %c0_42, %c0_43] : memref<2x2x16x48xf32, #tpu.memory_space<vmem>>, vector<1x1x16x48xf32>
    %69 = vector.shape_cast %68 : vector<1x1x16x48xf32> to vector<16x48xf32>
    %cst_44 = arith.constant dense<0.000000e+00> : vector<16x128xf32>
    %70 = tpu.matmul %69, %67, %cst_44 {dimension_numbers = #tpu.dot_dimension_numbers<[1], [0], [0], [1], [0, 0, 1, 1], [], []>} : vector<16x48xf32>, vector<48x128xf32>, vector<16x128xf32> -> vector<16x128xf32>
    %c0_45 = arith.constant 0 : index
    %c0_46 = arith.constant 0 : index
    %c0_47 = arith.constant 0 : index
    %c0_48 = arith.constant 0 : index
    %71 = vector.load %arg11[%c0_45, %c0_46, %c0_47, %c0_48] : memref<2x2x16x1xf32, #tpu.memory_space<vmem>>, vector<1x1x16x1xf32>
    %72 = vector.shape_cast %71 : vector<1x1x16x1xf32> to vector<16x1xf32>
    %cst_49 = arith.constant 0.000000e+00 : f32
    %73 = vector.broadcast %cst_49 : f32 to vector<16x128xf32>
    %74 = arith.cmpf oge, %70, %73 : vector<16x128xf32>
    %75 = vector.broadcast %72 : vector<16x1xf32> to vector<16x128xf32>
    %76 = arith.mulf %75, %70 : vector<16x128xf32>
    %77 = arith.select %74, %70, %76 : vector<16x128xi1>, vector<16x128xf32>
    %c0_50 = arith.constant 0 : index
    %c0_51 = arith.constant 0 : index
    %c0_52 = arith.constant 0 : index
    %c0_53 = arith.constant 0 : index
    %78 = vector.load %arg12[%c0_50, %c0_51, %c0_52, %c0_53] : memref<2x2x16x1xf32, #tpu.memory_space<vmem>>, vector<1x1x16x1xf32>
    %79 = vector.shape_cast %78 : vector<1x1x16x1xf32> to vector<16x1xf32>
    %c0_54 = arith.constant 0 : index
    %c0_55 = arith.constant 0 : index
    %c0_56 = arith.constant 0 : index
    %c0_57 = arith.constant 0 : index
    %80 = vector.load %arg13[%c0_54, %c0_55, %c0_56, %c0_57] : memref<2x2x16x1xf32, #tpu.memory_space<vmem>>, vector<1x1x16x1xf32>
    %81 = vector.shape_cast %80 : vector<1x1x16x1xf32> to vector<16x1xf32>
    %cst_58 = arith.constant dense<0.000000e+00> : vector<16xf32>
    %82 = vector.multi_reduction <add>, %77, %cst_58 [1] : vector<16x128xf32> to vector<16xf32>
    %83 = vector.shape_cast %82 : vector<16xf32> to vector<16x1xf32>
    %84 = arith.mulf %77, %77 : vector<16x128xf32>
    %cst_59 = arith.constant dense<0.000000e+00> : vector<16xf32>
    %85 = vector.multi_reduction <add>, %84, %cst_59 [1] : vector<16x128xf32> to vector<16xf32>
    %86 = vector.shape_cast %85 : vector<16xf32> to vector<16x1xf32>
    %cst_60 = arith.constant 7.812500e-03 : f32
    %87 = vector.broadcast %cst_60 : f32 to vector<16x1xf32>
    %88 = arith.mulf %83, %87 : vector<16x1xf32>
    %cst_61 = arith.constant 7.812500e-03 : f32
    %89 = vector.broadcast %cst_61 : f32 to vector<16x1xf32>
    %90 = arith.mulf %86, %89 : vector<16x1xf32>
    %91 = arith.mulf %88, %88 : vector<16x1xf32>
    %92 = arith.subf %90, %91 : vector<16x1xf32>
    %93 = vector.broadcast %88 : vector<16x1xf32> to vector<16x128xf32>
    %94 = arith.subf %77, %93 : vector<16x128xf32>
    %cst_62 = arith.constant 9.99999974E-6 : f32
    %95 = vector.broadcast %cst_62 : f32 to vector<16x1xf32>
    %96 = arith.addf %92, %95 : vector<16x1xf32>
    %97 = math.rsqrt %96 : vector<16x1xf32>
    %98 = vector.broadcast %97 : vector<16x1xf32> to vector<16x128xf32>
    %99 = arith.mulf %94, %98 : vector<16x128xf32>
    %100 = vector.broadcast %79 : vector<16x1xf32> to vector<16x128xf32>
    %101 = arith.mulf %99, %100 : vector<16x128xf32>
    %102 = vector.broadcast %81 : vector<16x1xf32> to vector<16x128xf32>
    %103 = arith.addf %101, %102 : vector<16x128xf32>
    %c0_63 = arith.constant 0 : index
    %c0_64 = arith.constant 0 : index
    %c0_65 = arith.constant 0 : index
    %c0_66 = arith.constant 0 : index
    %104 = vector.load %arg14[%c0_63, %c0_64, %c0_65, %c0_66] : memref<2x2x32x16xf32, #tpu.memory_space<vmem>>, vector<1x1x32x16xf32>
    %105 = vector.shape_cast %104 : vector<1x1x32x16xf32> to vector<32x16xf32>
    %cst_67 = arith.constant dense<0.000000e+00> : vector<32x128xf32>
    %106 = tpu.matmul %105, %103, %cst_67 {dimension_numbers = #tpu.dot_dimension_numbers<[1], [0], [0], [1], [0, 0, 1, 1], [], []>} : vector<32x16xf32>, vector<16x128xf32>, vector<32x128xf32> -> vector<32x128xf32>
    %107 = arith.addf %106, %19 : vector<32x128xf32>
    %c0_68 = arith.constant 0 : index
    %c1 = arith.constant 1 : index
    %c0_69 = arith.constant 0 : index
    %c0_70 = arith.constant 0 : index
    %108 = vector.load %arg6[%c0_68, %c1, %c0_69, %c0_70] : memref<2x2x16x32xf32, #tpu.memory_space<vmem>>, vector<1x1x16x32xf32>
    %109 = vector.shape_cast %108 : vector<1x1x16x32xf32> to vector<16x32xf32>
    %cst_71 = arith.constant dense<0.000000e+00> : vector<16x128xf32>
    %110 = tpu.matmul %109, %107, %cst_71 {dimension_numbers = #tpu.dot_dimension_numbers<[1], [0], [0], [1], [0, 0, 1, 1], [], []>} : vector<16x32xf32>, vector<32x128xf32>, vector<16x128xf32> -> vector<16x128xf32>
    %c0_72 = arith.constant 0 : index
    %c1_73 = arith.constant 1 : index
    %c0_74 = arith.constant 0 : index
    %c0_75 = arith.constant 0 : index
    %111 = vector.load %arg7[%c0_72, %c1_73, %c0_74, %c0_75] : memref<2x2x16x1xf32, #tpu.memory_space<vmem>>, vector<1x1x16x1xf32>
    %112 = vector.shape_cast %111 : vector<1x1x16x1xf32> to vector<16x1xf32>
    %cst_76 = arith.constant 0.000000e+00 : f32
    %113 = vector.broadcast %cst_76 : f32 to vector<16x128xf32>
    %114 = arith.cmpf oge, %110, %113 : vector<16x128xf32>
    %115 = vector.broadcast %112 : vector<16x1xf32> to vector<16x128xf32>
    %116 = arith.mulf %115, %110 : vector<16x128xf32>
    %117 = arith.select %114, %110, %116 : vector<16x128xi1>, vector<16x128xf32>
    %c0_77 = arith.constant 0 : index
    %c1_78 = arith.constant 1 : index
    %c0_79 = arith.constant 0 : index
    %c0_80 = arith.constant 0 : index
    %118 = vector.load %arg8[%c0_77, %c1_78, %c0_79, %c0_80] : memref<2x2x16x1xf32, #tpu.memory_space<vmem>>, vector<1x1x16x1xf32>
    %119 = vector.shape_cast %118 : vector<1x1x16x1xf32> to vector<16x1xf32>
    %c0_81 = arith.constant 0 : index
    %c1_82 = arith.constant 1 : index
    %c0_83 = arith.constant 0 : index
    %c0_84 = arith.constant 0 : index
    %120 = vector.load %arg9[%c0_81, %c1_82, %c0_83, %c0_84] : memref<2x2x16x1xf32, #tpu.memory_space<vmem>>, vector<1x1x16x1xf32>
    %121 = vector.shape_cast %120 : vector<1x1x16x1xf32> to vector<16x1xf32>
    %cst_85 = arith.constant dense<0.000000e+00> : vector<16xf32>
    %122 = vector.multi_reduction <add>, %117, %cst_85 [1] : vector<16x128xf32> to vector<16xf32>
    %123 = vector.shape_cast %122 : vector<16xf32> to vector<16x1xf32>
    %124 = arith.mulf %117, %117 : vector<16x128xf32>
    %cst_86 = arith.constant dense<0.000000e+00> : vector<16xf32>
    %125 = vector.multi_reduction <add>, %124, %cst_86 [1] : vector<16x128xf32> to vector<16xf32>
    %126 = vector.shape_cast %125 : vector<16xf32> to vector<16x1xf32>
    %cst_87 = arith.constant 7.812500e-03 : f32
    %127 = vector.broadcast %cst_87 : f32 to vector<16x1xf32>
    %128 = arith.mulf %123, %127 : vector<16x1xf32>
    %cst_88 = arith.constant 7.812500e-03 : f32
    %129 = vector.broadcast %cst_88 : f32 to vector<16x1xf32>
    %130 = arith.mulf %126, %129 : vector<16x1xf32>
    %131 = arith.mulf %128, %128 : vector<16x1xf32>
    %132 = arith.subf %130, %131 : vector<16x1xf32>
    %133 = vector.broadcast %128 : vector<16x1xf32> to vector<16x128xf32>
    %134 = arith.subf %117, %133 : vector<16x128xf32>
    %cst_89 = arith.constant 9.99999974E-6 : f32
    %135 = vector.broadcast %cst_89 : f32 to vector<16x1xf32>
    %136 = arith.addf %132, %135 : vector<16x1xf32>
    %137 = math.rsqrt %136 : vector<16x1xf32>
    %138 = vector.broadcast %137 : vector<16x1xf32> to vector<16x128xf32>
    %139 = arith.mulf %134, %138 : vector<16x128xf32>
    %140 = vector.broadcast %119 : vector<16x1xf32> to vector<16x128xf32>
    %141 = arith.mulf %139, %140 : vector<16x128xf32>
    %142 = vector.broadcast %121 : vector<16x1xf32> to vector<16x128xf32>
    %143 = arith.addf %141, %142 : vector<16x128xf32>
    %144 = tpu.iota {dimensions = array<i32: 1>} : vector<16x128xi32>
    %c4_i32 = arith.constant 4 : i32
    %145 = tpu.dynamic_rotate %143 by %c4_i32 dim 1 : vector<16x128xf32>, i32 -> vector<16x128xf32>
    %c4_i32_90 = arith.constant 4 : i32
    %146 = vector.broadcast %c4_i32_90 : i32 to vector<16x128xi32>
    %147 = arith.cmpi sge, %144, %146 : vector<16x128xi32>
    %cst_91 = arith.constant 0.000000e+00 : f32
    %148 = vector.broadcast %cst_91 : f32 to vector<16x128xf32>
    %149 = arith.select %147, %145, %148 : vector<16x128xi1>, vector<16x128xf32>
    %c2_i32_92 = arith.constant 2 : i32
    %150 = tpu.dynamic_rotate %143 by %c2_i32_92 dim 1 : vector<16x128xf32>, i32 -> vector<16x128xf32>
    %c2_i32_93 = arith.constant 2 : i32
    %151 = vector.broadcast %c2_i32_93 : i32 to vector<16x128xi32>
    %152 = arith.cmpi sge, %144, %151 : vector<16x128xi32>
    %cst_94 = arith.constant 0.000000e+00 : f32
    %153 = vector.broadcast %cst_94 : f32 to vector<16x128xf32>
    %154 = arith.select %152, %150, %153 : vector<16x128xi1>, vector<16x128xf32>
    %155 = tpu.concatenate %149, %154, %143 in 0 : vector<16x128xf32>, vector<16x128xf32>, vector<16x128xf32> -> vector<48x128xf32>
    %c0_95 = arith.constant 0 : index
    %c1_96 = arith.constant 1 : index
    %c0_97 = arith.constant 0 : index
    %c0_98 = arith.constant 0 : index
    %156 = vector.load %arg10[%c0_95, %c1_96, %c0_97, %c0_98] : memref<2x2x16x48xf32, #tpu.memory_space<vmem>>, vector<1x1x16x48xf32>
    %157 = vector.shape_cast %156 : vector<1x1x16x48xf32> to vector<16x48xf32>
    %cst_99 = arith.constant dense<0.000000e+00> : vector<16x128xf32>
    %158 = tpu.matmul %157, %155, %cst_99 {dimension_numbers = #tpu.dot_dimension_numbers<[1], [0], [0], [1], [0, 0, 1, 1], [], []>} : vector<16x48xf32>, vector<48x128xf32>, vector<16x128xf32> -> vector<16x128xf32>
    %c0_100 = arith.constant 0 : index
    %c1_101 = arith.constant 1 : index
    %c0_102 = arith.constant 0 : index
    %c0_103 = arith.constant 0 : index
    %159 = vector.load %arg11[%c0_100, %c1_101, %c0_102, %c0_103] : memref<2x2x16x1xf32, #tpu.memory_space<vmem>>, vector<1x1x16x1xf32>
    %160 = vector.shape_cast %159 : vector<1x1x16x1xf32> to vector<16x1xf32>
    %cst_104 = arith.constant 0.000000e+00 : f32
    %161 = vector.broadcast %cst_104 : f32 to vector<16x128xf32>
    %162 = arith.cmpf oge, %158, %161 : vector<16x128xf32>
    %163 = vector.broadcast %160 : vector<16x1xf32> to vector<16x128xf32>
    %164 = arith.mulf %163, %158 : vector<16x128xf32>
    %165 = arith.select %162, %158, %164 : vector<16x128xi1>, vector<16x128xf32>
    %c0_105 = arith.constant 0 : index
    %c1_106 = arith.constant 1 : index
    %c0_107 = arith.constant 0 : index
    %c0_108 = arith.constant 0 : index
    %166 = vector.load %arg12[%c0_105, %c1_106, %c0_107, %c0_108] : memref<2x2x16x1xf32, #tpu.memory_space<vmem>>, vector<1x1x16x1xf32>
    %167 = vector.shape_cast %166 : vector<1x1x16x1xf32> to vector<16x1xf32>
    %c0_109 = arith.constant 0 : index
    %c1_110 = arith.constant 1 : index
    %c0_111 = arith.constant 0 : index
    %c0_112 = arith.constant 0 : index
    %168 = vector.load %arg13[%c0_109, %c1_110, %c0_111, %c0_112] : memref<2x2x16x1xf32, #tpu.memory_space<vmem>>, vector<1x1x16x1xf32>
    %169 = vector.shape_cast %168 : vector<1x1x16x1xf32> to vector<16x1xf32>
    %cst_113 = arith.constant dense<0.000000e+00> : vector<16xf32>
    %170 = vector.multi_reduction <add>, %165, %cst_113 [1] : vector<16x128xf32> to vector<16xf32>
    %171 = vector.shape_cast %170 : vector<16xf32> to vector<16x1xf32>
    %172 = arith.mulf %165, %165 : vector<16x128xf32>
    %cst_114 = arith.constant dense<0.000000e+00> : vector<16xf32>
    %173 = vector.multi_reduction <add>, %172, %cst_114 [1] : vector<16x128xf32> to vector<16xf32>
    %174 = vector.shape_cast %173 : vector<16xf32> to vector<16x1xf32>
    %cst_115 = arith.constant 7.812500e-03 : f32
    %175 = vector.broadcast %cst_115 : f32 to vector<16x1xf32>
    %176 = arith.mulf %171, %175 : vector<16x1xf32>
    %cst_116 = arith.constant 7.812500e-03 : f32
    %177 = vector.broadcast %cst_116 : f32 to vector<16x1xf32>
    %178 = arith.mulf %174, %177 : vector<16x1xf32>
    %179 = arith.mulf %176, %176 : vector<16x1xf32>
    %180 = arith.subf %178, %179 : vector<16x1xf32>
    %181 = vector.broadcast %176 : vector<16x1xf32> to vector<16x128xf32>
    %182 = arith.subf %165, %181 : vector<16x128xf32>
    %cst_117 = arith.constant 9.99999974E-6 : f32
    %183 = vector.broadcast %cst_117 : f32 to vector<16x1xf32>
    %184 = arith.addf %180, %183 : vector<16x1xf32>
    %185 = math.rsqrt %184 : vector<16x1xf32>
    %186 = vector.broadcast %185 : vector<16x1xf32> to vector<16x128xf32>
    %187 = arith.mulf %182, %186 : vector<16x128xf32>
    %188 = vector.broadcast %167 : vector<16x1xf32> to vector<16x128xf32>
    %189 = arith.mulf %187, %188 : vector<16x128xf32>
    %190 = vector.broadcast %169 : vector<16x1xf32> to vector<16x128xf32>
    %191 = arith.addf %189, %190 : vector<16x128xf32>
    %c0_118 = arith.constant 0 : index
    %c1_119 = arith.constant 1 : index
    %c0_120 = arith.constant 0 : index
    %c0_121 = arith.constant 0 : index
    %192 = vector.load %arg14[%c0_118, %c1_119, %c0_120, %c0_121] : memref<2x2x32x16xf32, #tpu.memory_space<vmem>>, vector<1x1x32x16xf32>
    %193 = vector.shape_cast %192 : vector<1x1x32x16xf32> to vector<32x16xf32>
    %cst_122 = arith.constant dense<0.000000e+00> : vector<32x128xf32>
    %194 = tpu.matmul %193, %191, %cst_122 {dimension_numbers = #tpu.dot_dimension_numbers<[1], [0], [0], [1], [0, 0, 1, 1], [], []>} : vector<32x16xf32>, vector<16x128xf32>, vector<32x128xf32> -> vector<32x128xf32>
    %195 = arith.addf %194, %107 : vector<32x128xf32>
    %c1_123 = arith.constant 1 : index
    %c0_124 = arith.constant 0 : index
    %c0_125 = arith.constant 0 : index
    %c0_126 = arith.constant 0 : index
    %196 = vector.load %arg6[%c1_123, %c0_124, %c0_125, %c0_126] : memref<2x2x16x32xf32, #tpu.memory_space<vmem>>, vector<1x1x16x32xf32>
    %197 = vector.shape_cast %196 : vector<1x1x16x32xf32> to vector<16x32xf32>
    %cst_127 = arith.constant dense<0.000000e+00> : vector<16x128xf32>
    %198 = tpu.matmul %197, %19, %cst_127 {dimension_numbers = #tpu.dot_dimension_numbers<[1], [0], [0], [1], [0, 0, 1, 1], [], []>} : vector<16x32xf32>, vector<32x128xf32>, vector<16x128xf32> -> vector<16x128xf32>
    %c1_128 = arith.constant 1 : index
    %c0_129 = arith.constant 0 : index
    %c0_130 = arith.constant 0 : index
    %c0_131 = arith.constant 0 : index
    %199 = vector.load %arg7[%c1_128, %c0_129, %c0_130, %c0_131] : memref<2x2x16x1xf32, #tpu.memory_space<vmem>>, vector<1x1x16x1xf32>
    %200 = vector.shape_cast %199 : vector<1x1x16x1xf32> to vector<16x1xf32>
    %cst_132 = arith.constant 0.000000e+00 : f32
    %201 = vector.broadcast %cst_132 : f32 to vector<16x128xf32>
    %202 = arith.cmpf oge, %198, %201 : vector<16x128xf32>
    %203 = vector.broadcast %200 : vector<16x1xf32> to vector<16x128xf32>
    %204 = arith.mulf %203, %198 : vector<16x128xf32>
    %205 = arith.select %202, %198, %204 : vector<16x128xi1>, vector<16x128xf32>
    %c1_133 = arith.constant 1 : index
    %c0_134 = arith.constant 0 : index
    %c0_135 = arith.constant 0 : index
    %c0_136 = arith.constant 0 : index
    %206 = vector.load %arg8[%c1_133, %c0_134, %c0_135, %c0_136] : memref<2x2x16x1xf32, #tpu.memory_space<vmem>>, vector<1x1x16x1xf32>
    %207 = vector.shape_cast %206 : vector<1x1x16x1xf32> to vector<16x1xf32>
    %c1_137 = arith.constant 1 : index
    %c0_138 = arith.constant 0 : index
    %c0_139 = arith.constant 0 : index
    %c0_140 = arith.constant 0 : index
    %208 = vector.load %arg9[%c1_137, %c0_138, %c0_139, %c0_140] : memref<2x2x16x1xf32, #tpu.memory_space<vmem>>, vector<1x1x16x1xf32>
    %209 = vector.shape_cast %208 : vector<1x1x16x1xf32> to vector<16x1xf32>
    %cst_141 = arith.constant dense<0.000000e+00> : vector<16xf32>
    %210 = vector.multi_reduction <add>, %205, %cst_141 [1] : vector<16x128xf32> to vector<16xf32>
    %211 = vector.shape_cast %210 : vector<16xf32> to vector<16x1xf32>
    %212 = arith.mulf %205, %205 : vector<16x128xf32>
    %cst_142 = arith.constant dense<0.000000e+00> : vector<16xf32>
    %213 = vector.multi_reduction <add>, %212, %cst_142 [1] : vector<16x128xf32> to vector<16xf32>
    %214 = vector.shape_cast %213 : vector<16xf32> to vector<16x1xf32>
    %cst_143 = arith.constant 7.812500e-03 : f32
    %215 = vector.broadcast %cst_143 : f32 to vector<16x1xf32>
    %216 = arith.mulf %211, %215 : vector<16x1xf32>
    %cst_144 = arith.constant 7.812500e-03 : f32
    %217 = vector.broadcast %cst_144 : f32 to vector<16x1xf32>
    %218 = arith.mulf %214, %217 : vector<16x1xf32>
    %219 = arith.mulf %216, %216 : vector<16x1xf32>
    %220 = arith.subf %218, %219 : vector<16x1xf32>
    %221 = vector.broadcast %216 : vector<16x1xf32> to vector<16x128xf32>
    %222 = arith.subf %205, %221 : vector<16x128xf32>
    %cst_145 = arith.constant 9.99999974E-6 : f32
    %223 = vector.broadcast %cst_145 : f32 to vector<16x1xf32>
    %224 = arith.addf %220, %223 : vector<16x1xf32>
    %225 = math.rsqrt %224 : vector<16x1xf32>
    %226 = vector.broadcast %225 : vector<16x1xf32> to vector<16x128xf32>
    %227 = arith.mulf %222, %226 : vector<16x128xf32>
    %228 = vector.broadcast %207 : vector<16x1xf32> to vector<16x128xf32>
    %229 = arith.mulf %227, %228 : vector<16x128xf32>
    %230 = vector.broadcast %209 : vector<16x1xf32> to vector<16x128xf32>
    %231 = arith.addf %229, %230 : vector<16x128xf32>
    %232 = tpu.iota {dimensions = array<i32: 1>} : vector<16x128xi32>
    %c2_i32_146 = arith.constant 2 : i32
    %233 = tpu.dynamic_rotate %231 by %c2_i32_146 dim 1 : vector<16x128xf32>, i32 -> vector<16x128xf32>
    %c2_i32_147 = arith.constant 2 : i32
    %234 = vector.broadcast %c2_i32_147 : i32 to vector<16x128xi32>
    %235 = arith.cmpi sge, %232, %234 : vector<16x128xi32>
    %cst_148 = arith.constant 0.000000e+00 : f32
    %236 = vector.broadcast %cst_148 : f32 to vector<16x128xf32>
    %237 = arith.select %235, %233, %236 : vector<16x128xi1>, vector<16x128xf32>
    %c1_i32_149 = arith.constant 1 : i32
    %238 = tpu.dynamic_rotate %231 by %c1_i32_149 dim 1 : vector<16x128xf32>, i32 -> vector<16x128xf32>
    %c1_i32_150 = arith.constant 1 : i32
    %239 = vector.broadcast %c1_i32_150 : i32 to vector<16x128xi32>
    %240 = arith.cmpi sge, %232, %239 : vector<16x128xi32>
    %cst_151 = arith.constant 0.000000e+00 : f32
    %241 = vector.broadcast %cst_151 : f32 to vector<16x128xf32>
    %242 = arith.select %240, %238, %241 : vector<16x128xi1>, vector<16x128xf32>
    %243 = tpu.concatenate %237, %242, %231 in 0 : vector<16x128xf32>, vector<16x128xf32>, vector<16x128xf32> -> vector<48x128xf32>
    %c1_152 = arith.constant 1 : index
    %c0_153 = arith.constant 0 : index
    %c0_154 = arith.constant 0 : index
    %c0_155 = arith.constant 0 : index
    %244 = vector.load %arg10[%c1_152, %c0_153, %c0_154, %c0_155] : memref<2x2x16x48xf32, #tpu.memory_space<vmem>>, vector<1x1x16x48xf32>
    %245 = vector.shape_cast %244 : vector<1x1x16x48xf32> to vector<16x48xf32>
    %cst_156 = arith.constant dense<0.000000e+00> : vector<16x128xf32>
    %246 = tpu.matmul %245, %243, %cst_156 {dimension_numbers = #tpu.dot_dimension_numbers<[1], [0], [0], [1], [0, 0, 1, 1], [], []>} : vector<16x48xf32>, vector<48x128xf32>, vector<16x128xf32> -> vector<16x128xf32>
    %c1_157 = arith.constant 1 : index
    %c0_158 = arith.constant 0 : index
    %c0_159 = arith.constant 0 : index
    %c0_160 = arith.constant 0 : index
    %247 = vector.load %arg11[%c1_157, %c0_158, %c0_159, %c0_160] : memref<2x2x16x1xf32, #tpu.memory_space<vmem>>, vector<1x1x16x1xf32>
    %248 = vector.shape_cast %247 : vector<1x1x16x1xf32> to vector<16x1xf32>
    %cst_161 = arith.constant 0.000000e+00 : f32
    %249 = vector.broadcast %cst_161 : f32 to vector<16x128xf32>
    %250 = arith.cmpf oge, %246, %249 : vector<16x128xf32>
    %251 = vector.broadcast %248 : vector<16x1xf32> to vector<16x128xf32>
    %252 = arith.mulf %251, %246 : vector<16x128xf32>
    %253 = arith.select %250, %246, %252 : vector<16x128xi1>, vector<16x128xf32>
    %c1_162 = arith.constant 1 : index
    %c0_163 = arith.constant 0 : index
    %c0_164 = arith.constant 0 : index
    %c0_165 = arith.constant 0 : index
    %254 = vector.load %arg12[%c1_162, %c0_163, %c0_164, %c0_165] : memref<2x2x16x1xf32, #tpu.memory_space<vmem>>, vector<1x1x16x1xf32>
    %255 = vector.shape_cast %254 : vector<1x1x16x1xf32> to vector<16x1xf32>
    %c1_166 = arith.constant 1 : index
    %c0_167 = arith.constant 0 : index
    %c0_168 = arith.constant 0 : index
    %c0_169 = arith.constant 0 : index
    %256 = vector.load %arg13[%c1_166, %c0_167, %c0_168, %c0_169] : memref<2x2x16x1xf32, #tpu.memory_space<vmem>>, vector<1x1x16x1xf32>
    %257 = vector.shape_cast %256 : vector<1x1x16x1xf32> to vector<16x1xf32>
    %cst_170 = arith.constant dense<0.000000e+00> : vector<16xf32>
    %258 = vector.multi_reduction <add>, %253, %cst_170 [1] : vector<16x128xf32> to vector<16xf32>
    %259 = vector.shape_cast %258 : vector<16xf32> to vector<16x1xf32>
    %260 = arith.mulf %253, %253 : vector<16x128xf32>
    %cst_171 = arith.constant dense<0.000000e+00> : vector<16xf32>
    %261 = vector.multi_reduction <add>, %260, %cst_171 [1] : vector<16x128xf32> to vector<16xf32>
    %262 = vector.shape_cast %261 : vector<16xf32> to vector<16x1xf32>
    %cst_172 = arith.constant 7.812500e-03 : f32
    %263 = vector.broadcast %cst_172 : f32 to vector<16x1xf32>
    %264 = arith.mulf %259, %263 : vector<16x1xf32>
    %cst_173 = arith.constant 7.812500e-03 : f32
    %265 = vector.broadcast %cst_173 : f32 to vector<16x1xf32>
    %266 = arith.mulf %262, %265 : vector<16x1xf32>
    %267 = arith.mulf %264, %264 : vector<16x1xf32>
    %268 = arith.subf %266, %267 : vector<16x1xf32>
    %269 = vector.broadcast %264 : vector<16x1xf32> to vector<16x128xf32>
    %270 = arith.subf %253, %269 : vector<16x128xf32>
    %cst_174 = arith.constant 9.99999974E-6 : f32
    %271 = vector.broadcast %cst_174 : f32 to vector<16x1xf32>
    %272 = arith.addf %268, %271 : vector<16x1xf32>
    %273 = math.rsqrt %272 : vector<16x1xf32>
    %274 = vector.broadcast %273 : vector<16x1xf32> to vector<16x128xf32>
    %275 = arith.mulf %270, %274 : vector<16x128xf32>
    %276 = vector.broadcast %255 : vector<16x1xf32> to vector<16x128xf32>
    %277 = arith.mulf %275, %276 : vector<16x128xf32>
    %278 = vector.broadcast %257 : vector<16x1xf32> to vector<16x128xf32>
    %279 = arith.addf %277, %278 : vector<16x128xf32>
    %c1_175 = arith.constant 1 : index
    %c0_176 = arith.constant 0 : index
    %c0_177 = arith.constant 0 : index
    %c0_178 = arith.constant 0 : index
    %280 = vector.load %arg14[%c1_175, %c0_176, %c0_177, %c0_178] : memref<2x2x32x16xf32, #tpu.memory_space<vmem>>, vector<1x1x32x16xf32>
    %281 = vector.shape_cast %280 : vector<1x1x32x16xf32> to vector<32x16xf32>
    %cst_179 = arith.constant dense<0.000000e+00> : vector<32x128xf32>
    %282 = tpu.matmul %281, %279, %cst_179 {dimension_numbers = #tpu.dot_dimension_numbers<[1], [0], [0], [1], [0, 0, 1, 1], [], []>} : vector<32x16xf32>, vector<16x128xf32>, vector<32x128xf32> -> vector<32x128xf32>
    %283 = arith.addf %282, %19 : vector<32x128xf32>
    %c1_180 = arith.constant 1 : index
    %c1_181 = arith.constant 1 : index
    %c0_182 = arith.constant 0 : index
    %c0_183 = arith.constant 0 : index
    %284 = vector.load %arg6[%c1_180, %c1_181, %c0_182, %c0_183] : memref<2x2x16x32xf32, #tpu.memory_space<vmem>>, vector<1x1x16x32xf32>
    %285 = vector.shape_cast %284 : vector<1x1x16x32xf32> to vector<16x32xf32>
    %cst_184 = arith.constant dense<0.000000e+00> : vector<16x128xf32>
    %286 = tpu.matmul %285, %283, %cst_184 {dimension_numbers = #tpu.dot_dimension_numbers<[1], [0], [0], [1], [0, 0, 1, 1], [], []>} : vector<16x32xf32>, vector<32x128xf32>, vector<16x128xf32> -> vector<16x128xf32>
    %c1_185 = arith.constant 1 : index
    %c1_186 = arith.constant 1 : index
    %c0_187 = arith.constant 0 : index
    %c0_188 = arith.constant 0 : index
    %287 = vector.load %arg7[%c1_185, %c1_186, %c0_187, %c0_188] : memref<2x2x16x1xf32, #tpu.memory_space<vmem>>, vector<1x1x16x1xf32>
    %288 = vector.shape_cast %287 : vector<1x1x16x1xf32> to vector<16x1xf32>
    %cst_189 = arith.constant 0.000000e+00 : f32
    %289 = vector.broadcast %cst_189 : f32 to vector<16x128xf32>
    %290 = arith.cmpf oge, %286, %289 : vector<16x128xf32>
    %291 = vector.broadcast %288 : vector<16x1xf32> to vector<16x128xf32>
    %292 = arith.mulf %291, %286 : vector<16x128xf32>
    %293 = arith.select %290, %286, %292 : vector<16x128xi1>, vector<16x128xf32>
    %c1_190 = arith.constant 1 : index
    %c1_191 = arith.constant 1 : index
    %c0_192 = arith.constant 0 : index
    %c0_193 = arith.constant 0 : index
    %294 = vector.load %arg8[%c1_190, %c1_191, %c0_192, %c0_193] : memref<2x2x16x1xf32, #tpu.memory_space<vmem>>, vector<1x1x16x1xf32>
    %295 = vector.shape_cast %294 : vector<1x1x16x1xf32> to vector<16x1xf32>
    %c1_194 = arith.constant 1 : index
    %c1_195 = arith.constant 1 : index
    %c0_196 = arith.constant 0 : index
    %c0_197 = arith.constant 0 : index
    %296 = vector.load %arg9[%c1_194, %c1_195, %c0_196, %c0_197] : memref<2x2x16x1xf32, #tpu.memory_space<vmem>>, vector<1x1x16x1xf32>
    %297 = vector.shape_cast %296 : vector<1x1x16x1xf32> to vector<16x1xf32>
    %cst_198 = arith.constant dense<0.000000e+00> : vector<16xf32>
    %298 = vector.multi_reduction <add>, %293, %cst_198 [1] : vector<16x128xf32> to vector<16xf32>
    %299 = vector.shape_cast %298 : vector<16xf32> to vector<16x1xf32>
    %300 = arith.mulf %293, %293 : vector<16x128xf32>
    %cst_199 = arith.constant dense<0.000000e+00> : vector<16xf32>
    %301 = vector.multi_reduction <add>, %300, %cst_199 [1] : vector<16x128xf32> to vector<16xf32>
    %302 = vector.shape_cast %301 : vector<16xf32> to vector<16x1xf32>
    %cst_200 = arith.constant 7.812500e-03 : f32
    %303 = vector.broadcast %cst_200 : f32 to vector<16x1xf32>
    %304 = arith.mulf %299, %303 : vector<16x1xf32>
    %cst_201 = arith.constant 7.812500e-03 : f32
    %305 = vector.broadcast %cst_201 : f32 to vector<16x1xf32>
    %306 = arith.mulf %302, %305 : vector<16x1xf32>
    %307 = arith.mulf %304, %304 : vector<16x1xf32>
    %308 = arith.subf %306, %307 : vector<16x1xf32>
    %309 = vector.broadcast %304 : vector<16x1xf32> to vector<16x128xf32>
    %310 = arith.subf %293, %309 : vector<16x128xf32>
    %cst_202 = arith.constant 9.99999974E-6 : f32
    %311 = vector.broadcast %cst_202 : f32 to vector<16x1xf32>
    %312 = arith.addf %308, %311 : vector<16x1xf32>
    %313 = math.rsqrt %312 : vector<16x1xf32>
    %314 = vector.broadcast %313 : vector<16x1xf32> to vector<16x128xf32>
    %315 = arith.mulf %310, %314 : vector<16x128xf32>
    %316 = vector.broadcast %295 : vector<16x1xf32> to vector<16x128xf32>
    %317 = arith.mulf %315, %316 : vector<16x128xf32>
    %318 = vector.broadcast %297 : vector<16x1xf32> to vector<16x128xf32>
    %319 = arith.addf %317, %318 : vector<16x128xf32>
    %320 = tpu.iota {dimensions = array<i32: 1>} : vector<16x128xi32>
    %c4_i32_203 = arith.constant 4 : i32
    %321 = tpu.dynamic_rotate %319 by %c4_i32_203 dim 1 : vector<16x128xf32>, i32 -> vector<16x128xf32>
    %c4_i32_204 = arith.constant 4 : i32
    %322 = vector.broadcast %c4_i32_204 : i32 to vector<16x128xi32>
    %323 = arith.cmpi sge, %320, %322 : vector<16x128xi32>
    %cst_205 = arith.constant 0.000000e+00 : f32
    %324 = vector.broadcast %cst_205 : f32 to vector<16x128xf32>
    %325 = arith.select %323, %321, %324 : vector<16x128xi1>, vector<16x128xf32>
    %c2_i32_206 = arith.constant 2 : i32
    %326 = tpu.dynamic_rotate %319 by %c2_i32_206 dim 1 : vector<16x128xf32>, i32 -> vector<16x128xf32>
    %c2_i32_207 = arith.constant 2 : i32
    %327 = vector.broadcast %c2_i32_207 : i32 to vector<16x128xi32>
    %328 = arith.cmpi sge, %320, %327 : vector<16x128xi32>
    %cst_208 = arith.constant 0.000000e+00 : f32
    %329 = vector.broadcast %cst_208 : f32 to vector<16x128xf32>
    %330 = arith.select %328, %326, %329 : vector<16x128xi1>, vector<16x128xf32>
    %331 = tpu.concatenate %325, %330, %319 in 0 : vector<16x128xf32>, vector<16x128xf32>, vector<16x128xf32> -> vector<48x128xf32>
    %c1_209 = arith.constant 1 : index
    %c1_210 = arith.constant 1 : index
    %c0_211 = arith.constant 0 : index
    %c0_212 = arith.constant 0 : index
    %332 = vector.load %arg10[%c1_209, %c1_210, %c0_211, %c0_212] : memref<2x2x16x48xf32, #tpu.memory_space<vmem>>, vector<1x1x16x48xf32>
    %333 = vector.shape_cast %332 : vector<1x1x16x48xf32> to vector<16x48xf32>
    %cst_213 = arith.constant dense<0.000000e+00> : vector<16x128xf32>
    %334 = tpu.matmul %333, %331, %cst_213 {dimension_numbers = #tpu.dot_dimension_numbers<[1], [0], [0], [1], [0, 0, 1, 1], [], []>} : vector<16x48xf32>, vector<48x128xf32>, vector<16x128xf32> -> vector<16x128xf32>
    %c1_214 = arith.constant 1 : index
    %c1_215 = arith.constant 1 : index
    %c0_216 = arith.constant 0 : index
    %c0_217 = arith.constant 0 : index
    %335 = vector.load %arg11[%c1_214, %c1_215, %c0_216, %c0_217] : memref<2x2x16x1xf32, #tpu.memory_space<vmem>>, vector<1x1x16x1xf32>
    %336 = vector.shape_cast %335 : vector<1x1x16x1xf32> to vector<16x1xf32>
    %cst_218 = arith.constant 0.000000e+00 : f32
    %337 = vector.broadcast %cst_218 : f32 to vector<16x128xf32>
    %338 = arith.cmpf oge, %334, %337 : vector<16x128xf32>
    %339 = vector.broadcast %336 : vector<16x1xf32> to vector<16x128xf32>
    %340 = arith.mulf %339, %334 : vector<16x128xf32>
    %341 = arith.select %338, %334, %340 : vector<16x128xi1>, vector<16x128xf32>
    %c1_219 = arith.constant 1 : index
    %c1_220 = arith.constant 1 : index
    %c0_221 = arith.constant 0 : index
    %c0_222 = arith.constant 0 : index
    %342 = vector.load %arg12[%c1_219, %c1_220, %c0_221, %c0_222] : memref<2x2x16x1xf32, #tpu.memory_space<vmem>>, vector<1x1x16x1xf32>
    %343 = vector.shape_cast %342 : vector<1x1x16x1xf32> to vector<16x1xf32>
    %c1_223 = arith.constant 1 : index
    %c1_224 = arith.constant 1 : index
    %c0_225 = arith.constant 0 : index
    %c0_226 = arith.constant 0 : index
    %344 = vector.load %arg13[%c1_223, %c1_224, %c0_225, %c0_226] : memref<2x2x16x1xf32, #tpu.memory_space<vmem>>, vector<1x1x16x1xf32>
    %345 = vector.shape_cast %344 : vector<1x1x16x1xf32> to vector<16x1xf32>
    %cst_227 = arith.constant dense<0.000000e+00> : vector<16xf32>
    %346 = vector.multi_reduction <add>, %341, %cst_227 [1] : vector<16x128xf32> to vector<16xf32>
    %347 = vector.shape_cast %346 : vector<16xf32> to vector<16x1xf32>
    %348 = arith.mulf %341, %341 : vector<16x128xf32>
    %cst_228 = arith.constant dense<0.000000e+00> : vector<16xf32>
    %349 = vector.multi_reduction <add>, %348, %cst_228 [1] : vector<16x128xf32> to vector<16xf32>
    %350 = vector.shape_cast %349 : vector<16xf32> to vector<16x1xf32>
    %cst_229 = arith.constant 7.812500e-03 : f32
    %351 = vector.broadcast %cst_229 : f32 to vector<16x1xf32>
    %352 = arith.mulf %347, %351 : vector<16x1xf32>
    %cst_230 = arith.constant 7.812500e-03 : f32
    %353 = vector.broadcast %cst_230 : f32 to vector<16x1xf32>
    %354 = arith.mulf %350, %353 : vector<16x1xf32>
    %355 = arith.mulf %352, %352 : vector<16x1xf32>
    %356 = arith.subf %354, %355 : vector<16x1xf32>
    %357 = vector.broadcast %352 : vector<16x1xf32> to vector<16x128xf32>
    %358 = arith.subf %341, %357 : vector<16x128xf32>
    %cst_231 = arith.constant 9.99999974E-6 : f32
    %359 = vector.broadcast %cst_231 : f32 to vector<16x1xf32>
    %360 = arith.addf %356, %359 : vector<16x1xf32>
    %361 = math.rsqrt %360 : vector<16x1xf32>
    %362 = vector.broadcast %361 : vector<16x1xf32> to vector<16x128xf32>
    %363 = arith.mulf %358, %362 : vector<16x128xf32>
    %364 = vector.broadcast %343 : vector<16x1xf32> to vector<16x128xf32>
    %365 = arith.mulf %363, %364 : vector<16x128xf32>
    %366 = vector.broadcast %345 : vector<16x1xf32> to vector<16x128xf32>
    %367 = arith.addf %365, %366 : vector<16x128xf32>
    %c1_232 = arith.constant 1 : index
    %c1_233 = arith.constant 1 : index
    %c0_234 = arith.constant 0 : index
    %c0_235 = arith.constant 0 : index
    %368 = vector.load %arg14[%c1_232, %c1_233, %c0_234, %c0_235] : memref<2x2x32x16xf32, #tpu.memory_space<vmem>>, vector<1x1x32x16xf32>
    %369 = vector.shape_cast %368 : vector<1x1x32x16xf32> to vector<32x16xf32>
    %cst_236 = arith.constant dense<0.000000e+00> : vector<32x128xf32>
    %370 = tpu.matmul %369, %367, %cst_236 {dimension_numbers = #tpu.dot_dimension_numbers<[1], [0], [0], [1], [0, 0, 1, 1], [], []>} : vector<32x16xf32>, vector<16x128xf32>, vector<32x128xf32> -> vector<32x128xf32>
    %371 = arith.addf %370, %283 : vector<32x128xf32>
    %c0_237 = arith.constant 0 : index
    %c0_238 = arith.constant 0 : index
    %c0_239 = arith.constant 0 : index
    %372 = vector.load %arg15[%c0_237, %c0_238, %c0_239] : memref<2x33x32xf32, #tpu.memory_space<vmem>>, vector<1x33x32xf32>
    %373 = vector.shape_cast %372 : vector<1x33x32xf32> to vector<33x32xf32>
    %cst_240 = arith.constant dense<0.000000e+00> : vector<33x128xf32>
    %374 = tpu.matmul %373, %195, %cst_240 {dimension_numbers = #tpu.dot_dimension_numbers<[1], [0], [0], [1], [0, 0, 1, 1], [], []>} : vector<33x32xf32>, vector<32x128xf32>, vector<33x128xf32> -> vector<33x128xf32>
    %c0_241 = arith.constant 0 : index
    %c0_242 = arith.constant 0 : index
    %c0_243 = arith.constant 0 : index
    %375 = vector.load %arg16[%c0_241, %c0_242, %c0_243] : memref<2x33x1xf32, #tpu.memory_space<vmem>>, vector<1x33x1xf32>
    %376 = vector.shape_cast %375 : vector<1x33x1xf32> to vector<33x1xf32>
    %377 = vector.broadcast %376 : vector<33x1xf32> to vector<33x128xf32>
    %378 = arith.addf %374, %377 : vector<33x128xf32>
    %c0_244 = arith.constant 0 : index
    %c0_245 = arith.constant 0 : index
    %c0_246 = arith.constant 0 : index
    %c0_247 = arith.constant 0 : index
    %379 = vector.load %arg17[%c0_244, %c0_245, %c0_246, %c0_247] : memref<1x2x33x128xf32, #tpu.memory_space<vmem>>, vector<1x1x33x128xf32>
    %380 = vector.shape_cast %379 : vector<1x1x33x128xf32> to vector<33x128xf32>
    %381 = vector.shape_cast %378 : vector<33x128xf32> to vector<1x1x33x128xf32>
    tpu.vector_store %arg17[%c0_244, %c0_245, %c0_246, %c0_247], %381 {strides = array<i32>} : memref<1x2x33x128xf32, #tpu.memory_space<vmem>>, vector<1x1x33x128xf32>,
    %c1_248 = arith.constant 1 : index
    %c0_249 = arith.constant 0 : index
    %c0_250 = arith.constant 0 : index
    %382 = vector.load %arg15[%c1_248, %c0_249, %c0_250] : memref<2x33x32xf32, #tpu.memory_space<vmem>>, vector<1x33x32xf32>
    %383 = vector.shape_cast %382 : vector<1x33x32xf32> to vector<33x32xf32>
    %cst_251 = arith.constant dense<0.000000e+00> : vector<33x128xf32>
    %384 = tpu.matmul %383, %371, %cst_251 {dimension_numbers = #tpu.dot_dimension_numbers<[1], [0], [0], [1], [0, 0, 1, 1], [], []>} : vector<33x32xf32>, vector<32x128xf32>, vector<33x128xf32> -> vector<33x128xf32>
    %c1_252 = arith.constant 1 : index
    %c0_253 = arith.constant 0 : index
    %c0_254 = arith.constant 0 : index
    %385 = vector.load %arg16[%c1_252, %c0_253, %c0_254] : memref<2x33x1xf32, #tpu.memory_space<vmem>>, vector<1x33x1xf32>
    %386 = vector.shape_cast %385 : vector<1x33x1xf32> to vector<33x1xf32>
    %387 = vector.broadcast %386 : vector<33x1xf32> to vector<33x128xf32>
    %388 = arith.addf %384, %387 : vector<33x128xf32>
    %c0_255 = arith.constant 0 : index
    %c1_256 = arith.constant 1 : index
    %c0_257 = arith.constant 0 : index
    %c0_258 = arith.constant 0 : index
    %389 = vector.load %arg17[%c0_255, %c1_256, %c0_257, %c0_258] : memref<1x2x33x128xf32, #tpu.memory_space<vmem>>, vector<1x1x33x128xf32>
    %390 = vector.shape_cast %389 : vector<1x1x33x128xf32> to vector<33x128xf32>
    %391 = vector.shape_cast %388 : vector<33x128xf32> to vector<1x1x33x128xf32>
    tpu.vector_store %arg17[%c0_255, %c1_256, %c0_257, %c0_258], %391 {strides = array<i32>} : memref<1x2x33x128xf32, #tpu.memory_space<vmem>>, vector<1x1x33x128xf32>,
    return
  }
  func.func @transform_0(%arg0: i32) -> (i32, i32, i32) {
    %c0_i32 = arith.constant 0 : i32
    %c0_i32_0 = arith.constant 0 : i32
    %c0_i32_1 = arith.constant 0 : i32
    return %arg0, %c0_i32, %c0_i32_0 : i32, i32, i32
  }
  func.func @transform_1(%arg0: i32) -> (i32, i32, i32) {
    %c0_i32 = arith.constant 0 : i32
    %c0_i32_0 = arith.constant 0 : i32
    %c0_i32_1 = arith.constant 0 : i32
    return %arg0, %c0_i32, %c0_i32_0 : i32, i32, i32
  }
  func.func @transform_2(%arg0: i32) -> (i32, i32) {
    %c0_i32 = arith.constant 0 : i32
    %c0_i32_0 = arith.constant 0 : i32
    %c0_i32_1 = arith.constant 0 : i32
    return %c0_i32, %c0_i32_0 : i32, i32
  }
  func.func @transform_3(%arg0: i32) -> (i32, i32) {
    %c0_i32 = arith.constant 0 : i32
    %c0_i32_0 = arith.constant 0 : i32
    %c0_i32_1 = arith.constant 0 : i32
    return %c0_i32, %c0_i32_0 : i32, i32
  }
  func.func @transform_4(%arg0: i32) -> (i32, i32) {
    %c0_i32 = arith.constant 0 : i32
    %c0_i32_0 = arith.constant 0 : i32
    %c0_i32_1 = arith.constant 0 : i32
    return %c0_i32, %c0_i32_0 : i32, i32
  }
  func.func @transform_5(%arg0: i32) -> (i32, i32, i32, i32) {
    %c0_i32 = arith.constant 0 : i32
    %c0_i32_0 = arith.constant 0 : i32
    %c0_i32_1 = arith.constant 0 : i32
    %c0_i32_2 = arith.constant 0 : i32
    %c0_i32_3 = arith.constant 0 : i32
    return %c0_i32, %c0_i32_0, %c0_i32_1, %c0_i32_2 : i32, i32, i32, i32
  }
  func.func @transform_6(%arg0: i32) -> (i32, i32, i32, i32) {
    %c0_i32 = arith.constant 0 : i32
    %c0_i32_0 = arith.constant 0 : i32
    %c0_i32_1 = arith.constant 0 : i32
    %c0_i32_2 = arith.constant 0 : i32
    %c0_i32_3 = arith.constant 0 : i32
    return %c0_i32, %c0_i32_0, %c0_i32_1, %c0_i32_2 : i32, i32, i32, i32
  }
  func.func @transform_7(%arg0: i32) -> (i32, i32, i32, i32) {
    %c0_i32 = arith.constant 0 : i32
    %c0_i32_0 = arith.constant 0 : i32
    %c0_i32_1 = arith.constant 0 : i32
    %c0_i32_2 = arith.constant 0 : i32
    %c0_i32_3 = arith.constant 0 : i32
    return %c0_i32, %c0_i32_0, %c0_i32_1, %c0_i32_2 : i32, i32, i32, i32
  }
  func.func @transform_8(%arg0: i32) -> (i32, i32, i32, i32) {
    %c0_i32 = arith.constant 0 : i32
    %c0_i32_0 = arith.constant 0 : i32
    %c0_i32_1 = arith.constant 0 : i32
    %c0_i32_2 = arith.constant 0 : i32
    %c0_i32_3 = arith.constant 0 : i32
    return %c0_i32, %c0_i32_0, %c0_i32_1, %c0_i32_2 : i32, i32, i32, i32
  }
  func.func @transform_9(%arg0: i32) -> (i32, i32, i32, i32) {
    %c0_i32 = arith.constant 0 : i32
    %c0_i32_0 = arith.constant 0 : i32
    %c0_i32_1 = arith.constant 0 : i32
    %c0_i32_2 = arith.constant 0 : i32
    %c0_i32_3 = arith.constant 0 : i32
    return %c0_i32, %c0_i32_0, %c0_i32_1, %c0_i32_2 : i32, i32, i32, i32
  }
  func.func @transform_10(%arg0: i32) -> (i32, i32, i32, i32) {
    %c0_i32 = arith.constant 0 : i32
    %c0_i32_0 = arith.constant 0 : i32
    %c0_i32_1 = arith.constant 0 : i32
    %c0_i32_2 = arith.constant 0 : i32
    %c0_i32_3 = arith.constant 0 : i32
    return %c0_i32, %c0_i32_0, %c0_i32_1, %c0_i32_2 : i32, i32, i32, i32
  }
  func.func @transform_11(%arg0: i32) -> (i32, i32, i32, i32) {
    %c0_i32 = arith.constant 0 : i32
    %c0_i32_0 = arith.constant 0 : i32
    %c0_i32_1 = arith.constant 0 : i32
    %c0_i32_2 = arith.constant 0 : i32
    %c0_i32_3 = arith.constant 0 : i32
    return %c0_i32, %c0_i32_0, %c0_i32_1, %c0_i32_2 : i32, i32, i32, i32
  }
  func.func @transform_12(%arg0: i32) -> (i32, i32, i32, i32) {
    %c0_i32 = arith.constant 0 : i32
    %c0_i32_0 = arith.constant 0 : i32
    %c0_i32_1 = arith.constant 0 : i32
    %c0_i32_2 = arith.constant 0 : i32
    %c0_i32_3 = arith.constant 0 : i32
    return %c0_i32, %c0_i32_0, %c0_i32_1, %c0_i32_2 : i32, i32, i32, i32
  }
  func.func @transform_13(%arg0: i32) -> (i32, i32, i32, i32) {
    %c0_i32 = arith.constant 0 : i32
    %c0_i32_0 = arith.constant 0 : i32
    %c0_i32_1 = arith.constant 0 : i32
    %c0_i32_2 = arith.constant 0 : i32
    %c0_i32_3 = arith.constant 0 : i32
    return %c0_i32, %c0_i32_0, %c0_i32_1, %c0_i32_2 : i32, i32, i32, i32
  }
  func.func @transform_14(%arg0: i32) -> (i32, i32, i32) {
    %c0_i32 = arith.constant 0 : i32
    %c0_i32_0 = arith.constant 0 : i32
    %c0_i32_1 = arith.constant 0 : i32
    %c0_i32_2 = arith.constant 0 : i32
    return %c0_i32, %c0_i32_0, %c0_i32_1 : i32, i32, i32
  }
  func.func @transform_15(%arg0: i32) -> (i32, i32, i32) {
    %c0_i32 = arith.constant 0 : i32
    %c0_i32_0 = arith.constant 0 : i32
    %c0_i32_1 = arith.constant 0 : i32
    %c0_i32_2 = arith.constant 0 : i32
    return %c0_i32, %c0_i32_0, %c0_i32_1 : i32, i32, i32
  }
  func.func @transform_16(%arg0: i32) -> (i32, i32, i32, i32) {
    %c0_i32 = arith.constant 0 : i32
    %c0_i32_0 = arith.constant 0 : i32
    %c0_i32_1 = arith.constant 0 : i32
    %c0_i32_2 = arith.constant 0 : i32
    return %arg0, %c0_i32, %c0_i32_0, %c0_i32_1 : i32, i32, i32, i32
  }
}

</mosaic_0001>

<bundles_post_ra>
// kernel: tpu_custom_call.1
= control target key start
LH: loop header
LB: loop body
LE: loop exit
PB: predicated region body
PF: predicated region fallthrough
CT: control target
= control target key end

     0   :  { %s3901_s21 = smov 0   ;;  %s4540_s0 = inlined_call_operand.vmem [shape: f32[2,32,128], index: 0, kind: input, shape index: {}]   ;;  %s4541_s1 = inlined_call_operand.vmem [shape: f32[2,66,128], index: 1, kind: input, shape index: {}]   ;;  %s4542_s2 = inlined_call_operand.vmem [shape: f32[64,32], index: 2, kind: input, shape index: {}]   ;;  %s4543_s3 = inlined_call_operand.vmem [shape: f32[64,66], index: 3, kind: input, shape index: {}]   ;;  %s4544_s4 = inlined_call_operand.vmem [shape: f32[64,1], index: 4, kind: input, shape index: {}]   ;;  %s4545_s5 = inlined_call_operand.vmem [shape: f32[2,2,16,32], index: 5, kind: input, shape index: {}]   ;;  %s4546_s6 = inlined_call_operand.vmem [shape: f32[2,2,16,1], index: 6, kind: input, shape index: {}]   ;;  %s4547_s7 = inlined_call_operand.vmem [shape: f32[2,2,16,1], index: 7, kind: input, shape index: {}]   ;;  %s4548_s8 = inlined_call_operand.vmem [shape: f32[2,2,16,1], index: 8, kind: input, shape index: {}]   ;;  %s4549_s9 = inlined_call_operand.vmem [shape: f32[2,2,16,48], index: 9, kind: input, shape index: {}]   ;;  %s4550_s10 = inlined_call_operand.vmem [shape: f32[2,2,16,1], index: 10, kind: input, shape index: {}]   ;;  %s4551_s11 = inlined_call_operand.vmem [shape: f32[2,2,16,1], index: 11, kind: input, shape index: {}]   ;;  %s4552_s12 = inlined_call_operand.vmem [shape: f32[2,2,16,1], index: 12, kind: input, shape index: {}]   ;;  %s4553_s13 = inlined_call_operand.vmem [shape: f32[2,2,32,16], index: 13, kind: input, shape index: {}]   ;;  %s4554_s14 = inlined_call_operand.vmem [shape: f32[2,33,32], index: 14, kind: input, shape index: {}]   ;;  %s4555_s15 = inlined_call_operand.vmem [shape: f32[2,33,1], index: 15, kind: input, shape index: {}]   ;;  %s4556_s16 = inlined_call_operand.vmem [shape: f32[2,2,33,128], index: 16, kind: output, shape index: {}]  }
   0x1   :  { %4557 = sst [smem:[#allocation2_spill]] %s4540_s0 }
   0x2 LB: > { %s3005_s22 = sadd.s32 4294967295, %s3807_s21   ;;  %p3009_p0 = scmp.ge.s32.totalorder %s3807_s21, 1  ;;  %s3807_s21 = sphi %s3901_s21, %s26_s21  }
   0x3   : > { %p472_p1 = scmp.lt.s32.totalorder %s3807_s21, 3 }
   0x5   : > { %p473_p2 = pnand %p3009_p0, %p472_p1 }
   0x6   : > { %p527_p3 = scmp.lt.s32.totalorder (!%p473_p2), %s3005_s22, 1  ;;  %v563_v0 = vld [vmem:[%s4543_s3] sm:$0xff] (!%p473_p2)  ;;  %vm571_vm0 = vcmask (!%p473_p2), 539648   ;;  %v3809_v1 = vmov (!%p473_p2), 0   ;;  %v841_v2 = vld [vmem:[%s4544_s4 + $0x30] sm:$0xff] (!%p473_p2)  ;;  %v842_v12 = vld [vmem:[%s4544_s4 + $0x38] sm:$0xff] (!%p473_p2) }
   0x7   : > { %476 = sbr.rel (%p473_p2) target bundleno = 4379 (0x111b), region = 84  ;;  %3316 = vmatprep.mubr.msk.f32.mxu0 (!%p473_p2), %vm571_vm0, %v563_v0  ;;  %3712 = vset.pattern.permute.xlu1 (!%p473_p2), %v3809_v1  ;;  %v839_v3 = vld [vmem:[%s4544_s4 + $0x20] sm:$0xff] (!%p473_p2)  ;;  %v840_v13 = vld [vmem:[%s4544_s4 + $0x28] sm:$0xff] (!%p473_p2)  ;;  %v838_v20 = vld [vmem:[%s4544_s4 + $0x18] sm:$0xff] (!%p473_p2)  ;;  %s4558_s19 = sld [smem:[#allocation2_spill]] (!%p473_p2)  ;;  %vm596_vm1 = vcmask (!%p473_p2), 1041408  }
   0x8   : > { %3711 = vset.pattern.permute.xlu0 (!%p473_p2), %v3809_v1  ;;  %875 = vperm.xlu1 (!%p473_p2), %3712, %v841_v2   ;;  %v836_v15 = vld [vmem:[%s4544_s4 + $0x8] sm:$0xff] (!%p473_p2)  ;;  %v835_v18 = vld [vmem:[%s4544_s4] sm:$0xff] (!%p473_p2)  ;;  %v837_v21 = vld [vmem:[%s4544_s4 + $0x10] sm:$0xff] (!%p473_p2)  ;;  %vm705_vm2 = vcmask (!%p473_p2), 261120   ;;  %s3810_s18 = smov (!%p473_p2), 1   ;;  %vm1092_vm5 = vcmask (!%p473_p2), 392192  }
   0x9   : > { %865 = vperm.xlu0 (!%p473_p2), %3711, %v839_v3   ;;  %v1003_v23 = vld [vmem:[%s4546_s6 + $0x8] sm:$0xff] (!%p473_p2)  ;;  %v1002_v26 = vld [vmem:[%s4546_s6] sm:$0xff] (!%p473_p2)  ;;  %v565_v32 = vld [vmem:[%s4543_s3 + $0x10] sm:$0xff] (!%p473_p2)  ;;  %vm1250_vm12 = vcmask (!%p473_p2), 130048  }
   0xa   : > { %v1020_v30 = vld [vmem:[%s4547_s7] sm:$0xff] (!%p473_p2)  ;;  %v564_v31 = vld [vmem:[%s4543_s3 + $0x8] sm:$0xff] (!%p473_p2)  ;;  %v566_v34 = vld [vmem:[%s4543_s3 + $0x18] sm:$0xff] (!%p473_p2) }
   0xb   : > { %v567_v35 = vld [vmem:[%s4543_s3 + $0x20] sm:$0xff] (!%p473_p2)  ;;  %v568_v36 = vld [vmem:[%s4543_s3 + $0x28] sm:$0xff] (!%p473_p2)  ;;  %v569_v37 = vld [vmem:[%s4543_s3 + $0x30] sm:$0xff] (!%p473_p2) }
   0xc   : > { %880 = vperm.xlu1 (!%p473_p2), %3712, %v842_v12   ;;  %v570_v38 = vld [vmem:[%s4543_s3 + $0x38] sm:$0xff] (!%p473_p2)  ;;  %v555_v39 = vld [vmem:[%s4542_s2] sm:$0xff] (!%p473_p2)  ;;  %v556_v40 = vld [vmem:[%s4542_s2 + $0x8] sm:$0xff] (!%p473_p2) }
   0xd   : > { %870 = vperm.xlu0 (!%p473_p2), %3711, %v840_v13   ;;  %v557_v41 = vld [vmem:[%s4542_s2 + $0x10] sm:$0xff] (!%p473_p2)  ;;  %v558_v42 = vld [vmem:[%s4542_s2 + $0x18] sm:$0xff] (!%p473_p2)  ;;  %v559_v43 = vld [vmem:[%s4542_s2 + $0x20] sm:$0xff] (!%p473_p2) }
   0xe   : > { %s4566_s22 = smov (!%p527_p3, %s3005_s22), 1  ;;  %v560_v44 = vld [vmem:[%s4542_s2 + $0x28] sm:$0xff]  ;;  %v561_v45 = vld [vmem:[%s4542_s2 + $0x30] sm:$0xff]  ;;  %v562_v46 = vld [vmem:[%s4542_s2 + $0x38] sm:$0xff] }
   0xf   : > { %s3694_s25 = smul.u32 72, %s4566_s22  ;;  %s3170_s28 = sshll.u32 %s4566_s22, 5  ;;  %v919_v47 = vld [vmem:[%s4545_s5] sm:$0xff] }
  0x10   : > { %850 = vperm.xlu1 %3712, %v836_v15   ;;  %s531_s20 = scalar_lea.vmem %s4558_s19, %s3170_s28  ;;  %3356 = vmatprep.mubr.msk.f32.mxu1 %vm705_vm2, %v919_v47  ;;  %s3812_s19 = smov 4  }
  0x11   : > { %s3925_s17 = scalar_lea.vmem %s4541_s1, %s3694_s25  ;;  %845 = vperm.xlu0 %3711, %v835_v18   ;;  %v542_v22 = vld [vmem:[%s531_s20] sm:$0xff]  ;;  %v543_v25 = vld [vmem:[%s531_s20 + $0x8] sm:$0xff]  ;;  %v544_v27 = vld [vmem:[%s531_s20 + $0x10] sm:$0xff] }
  0x12   : > { %v546_v4 = vld [vmem:[%s3925_s17] sm:$0xff]  ;;  %v547_v5 = vld [vmem:[%s3925_s17 + $0x8] sm:$0xff]  ;;  %v548_v6 = vld [vmem:[%s3925_s17 + $0x10] sm:$0xff]  ;;  %v3554_v29 = vpack.c.bf16 %v543_v25, %v542_v22 }
  0x13   : > { %v3538_v7 = vpack.c.bf16 %v547_v5, %v546_v4  ;;  %v549_v8 = vld [vmem:[%s3925_s17 + $0x18] sm:$0xff]  ;;  %v550_v10 = vld [vmem:[%s3925_s17 + $0x20] sm:$0xff]  ;;  %v551_v11 = vld [vmem:[%s3925_s17 + $0x28] sm:$0xff] }
  0x14   : > { %v3542_v9 = vpack.c.bf16 %v549_v8, %v548_v6  ;;  %v3546_v14 = vpack.c.bf16 %v551_v11, %v550_v10  ;;  %v552_v16 = vld [vmem:[%s3925_s17 + $0x30] sm:$0xff]  ;;  %v553_v17 = vld [vmem:[%s3925_s17 + $0x38] sm:$0xff]  ;;  %860 = vperm.xlu1 %3712, %v838_v20   ;;  %v554_v24 = vld [vmem:[%s3925_s17 + $0x40] sm:$0x3]  ;;  %s3811_s17 = smov 2  }
  0x15   : > { %3539 = vmatprep.subr.bf16.mxu0 %v3538_v7  ;;  %v3550_v19 = vpack.c.bf16 %v553_v17, %v552_v16  ;;  %855 = vperm.xlu0 %3711, %v837_v21   ;;  %v545_v28 = vld [vmem:[%s531_s20 + $0x18] sm:$0xff] }
  0x16   : > { %3541 = vmatpush3.bf16.msra.mxu0 %v3538_v7  ;;  %v3558_v33 = vpack.c.bf16 %v545_v28, %v544_v27 }
  0x17   : > { %3543 = vmatprep.subr.bf16.mxu0 %v3542_v9 }
  0x18   : > { %1013 = vperm.xlu1 %3712, %v1003_v23  }
  0x19   : > { %1008 = vperm.xlu0 %3711, %v1002_v26  }
  0x1a   : > { %3545 = vmatpush3.bf16.msra.mxu0 %v3542_v9 }
  0x1b   : > { %3547 = vmatprep.subr.bf16.mxu0 %v3546_v14 }
  0x1c   : > { %1052 = vperm.xlu1 %3712, %v1020_v30   ;;  %v920_v30 = vld [vmem:[%s4545_s5 + $0x8] sm:$0xff] }
  0x1e   : > { %3549 = vmatpush3.bf16.msra.mxu0 %v3546_v14 }
  0x1f   : > { %3551 = vmatprep.subr.bf16.mxu0 %v3550_v19 }
  0x22   : > { %3553 = vmatpush3.bf16.msra.mxu0 %v3550_v19 }
  0x23   : > { %3314 = vmatprep.subr.msk.mxu0 %vm596_vm1, %v554_v24 }
  0x26   : > { %3315 = vmatpush3.msk.msra.mxu0 %vm596_vm1, %v554_v24 }
  0x27   : > { %3317 = vmatmul.mubr.msk.f32.vlgmr.msra.gmra.mrb[0].mxu0 %vm571_vm0, %v564_v31  ;;  %3555 = vmatprep.subr.bf16.mxu0 %v3554_v29 }
  0x28   : > { %3557 = vmatpush3.bf16.msra.mxu0 %v3554_v29  ;;  %3319 = vmatprep.mubr.msk.f32.mxu0 %vm571_vm0, %v565_v32 }
  0x29   : > { %3559 = vmatprep.subr.bf16.mxu0 %v3558_v33 }
  0x2b   : > { %3320 = vmatmul.mubr.msk.f32.gmra.mrb[2].mxu0 %vm571_vm0, %v566_v34 }
  0x2c   : > { %3322 = vmatprep.mubr.msk.f32.mxu0 %vm571_vm0, %v567_v35  ;;  %3561 = vmatpush3.bf16.msra.mxu0 %v3558_v33 }
  0x2f   : > { %3323 = vmatmul.mubr.msk.f32.gmra.mrb[4].mxu0 %vm571_vm0, %v568_v36 }
  0x30   : > { %3325 = vmatprep.mubr.msk.f32.mxu0 %vm571_vm0, %v569_v37 }
  0x33   : > { %3326 = vmatmul.mubr.msk.f32.gmra.mrb[6].mxu0 %vm571_vm0, %v570_v38 }
  0x34   : > { %3336 = vmatprep.mubr.msk.f32.mxu0 %vm705_vm2, %v555_v39 }
  0x37   : > { %3337 = vmatmul.mubr.msk.f32.vlgmr.msra.gmra.mrb[0].mxu0 %vm705_vm2, %v556_v40 }
  0x38   : > { %3339 = vmatprep.mubr.msk.f32.mxu0 %vm705_vm2, %v557_v41  ;;  %v1022_v41 = vld [vmem:[%s4548_s8] sm:$0xff] }
  0x3b   : > { %3340 = vmatmul.mubr.msk.f32.gmra.mrb[2].mxu0 %vm705_vm2, %v558_v42  ;;  %v1023_v42 = vld [vmem:[%s4548_s8 + $0x8] sm:$0xff] }
  0x3c   : > { %3342 = vmatprep.mubr.msk.f32.mxu0 %vm705_vm2, %v559_v43  ;;  %v1021_v43 = vld [vmem:[%s4547_s7 + $0x8] sm:$0xff] }
  0x3f   : > { %3343 = vmatmul.mubr.msk.f32.gmra.mrb[4].mxu0 %vm705_vm2, %v560_v44 }
  0x40   : > { %3345 = vmatprep.mubr.msk.f32.mxu0 %vm705_vm2, %v561_v45 }
  0x43   : > { %3346 = vmatmul.mubr.msk.f32.gmra.mrb[6].mxu0 %vm705_vm2, %v562_v46 }
  0x87   : > { %v876_v53 = vpop.permute.xlu1 %875 }
  0x88   : > { %v866_v50 = vpop.permute.xlu0 %865 }
  0x8b   : > { %v881_v60 = vpop.permute.xlu1 %880 }
  0x8c   : > { %v871_v54 = vpop.permute.xlu0 %870 }
  0x8f   : > { %v851_v12 = vpop.permute.xlu1 %850 }
  0x90   : > { %v846_v13 = vpop.permute.xlu0 %845 }
  0x93   : > { %v861_v19 = vpop.permute.xlu1 %860 }
  0x94   : > { %v856_v21 = vpop.permute.xlu0 %855 }
  0x97   : > { %v1014_v31 = vpop.permute.xlu1 %1013 }
  0x98   : > { %v1009_v33 = vpop.permute.xlu0 %1008 }
  0x9b   : > { %v1053_v44 = vpop.permute.xlu1 %1052 }
 0x10a   : > { %v3338_v48 = vpop.f32.mrb[0].mxu0 }
 0x10b   : > { %v796_v49 = vpop.f32.mrb[1].mxu0  ;;  %v884_v14 = vadd.f32 %v3338_v48, %v851_v12  ;;  %v1174_v12 = vld [vmem:[%s4550_s10] sm:$0xff] }
 0x10c   : > { %v883_v16 = vadd.f32 %v846_v13, %v796_v49  ;;  %v1192_v13 = vld [vmem:[%s4551_s11] sm:$0xff] }
 0x10e   : > { %v3341_v51 = vpop.f32.mrb[2].mxu0 }
 0x10f   : > { %v806_v52 = vpop.f32.mrb[3].mxu0  ;;  %v886_v22 = vadd.f32 %v3341_v51, %v861_v19 }
 0x110   : > { %v885_v24 = vadd.f32 %v856_v21, %v806_v52 }
 0x112   : > { %v3344_v55 = vpop.f32.mrb[4].mxu0 }
 0x113   : > { %v888_v56 = vadd.f32 %v3344_v55, %v871_v54  ;;  %v816_v57 = vpop.f32.mrb[5].mxu0 }
 0x114   : > { %v887_v58 = vadd.f32 %v866_v50, %v816_v57 }
 0x115   : > { %v3032_v59 = vmul.f32 -1.442695, %v888_v56 }
 0x116   : > { %v3031_v61 = vmul.f32 -1.442695, %v887_v58  ;;  %v3347_v62 = vpop.f32.mrb[6].mxu0 }
 0x117   : > { %3753 = vpow2.f32 %v3032_v59  ;;  %v890_v63 = vadd.f32 %v3347_v62, %v881_v60  ;;  %v826_v0 = vpop.f32.mrb[7].mxu0 }
 0x118   : > { %3755 = vpow2.f32 %v3031_v61  ;;  %v889_v1 = vadd.f32 %v876_v53, %v826_v0 }
 0x119   : > { %v3034_v2 = vmul.f32 -1.442695, %v890_v63 }
 0x11a   : > { %v3033_v3 = vmul.f32 -1.442695, %v889_v1 }
 0x11b   : > { %3757 = vpow2.f32 %v3034_v2 }
 0x11c   : > { %3759 = vpow2.f32 %v3033_v3 }
 0x121   : > { %v3754_v4 = vpop.eup %3753 }
 0x122   : > { %v3756_v5 = vpop.eup %3755  ;;  %v904_v6 = vadd.f32 1.0, %v3754_v4 }
 0x123   : > { %v903_v7 = vadd.f32 1.0, %v3756_v5 }
 0x124   : > { %3761 = vrcp.f32 %v904_v6 }
 0x125   : > { %v3758_v8 = vpop.eup %3757  ;;  %3763 = vrcp.f32 %v903_v7 }
 0x126   : > { %v3760_v9 = vpop.eup %3759  ;;  %v906_v10 = vadd.f32 1.0, %v3758_v8 }
 0x127   : > { %v905_v11 = vadd.f32 1.0, %v3760_v9 }
 0x128   : > { %3765 = vrcp.f32 %v906_v10  ;;  %v1090_v10 = vld [vmem:[%s4549_s9] sm:$0xff] }
 0x129   : > { %3767 = vrcp.f32 %v905_v11  ;;  %v1175_v11 = vld [vmem:[%s4550_s10 + $0x8] sm:$0xff] }
 0x12e   : > { %v3762_v15 = vpop.eup %3761 }
 0x12f   : > { %v3764_v17 = vpop.eup %3763  ;;  %v4031_v18 = vmul.f32 %v3762_v15, %v884_v14  ;;  %v1074_v14 = vlaneseq }
 0x130   : > { %v4033_v20 = vmul.f32 %v3764_v17, %v883_v16 }
 0x131   : > { %v4071_v15 = vand.u32 127, %v1074_v14  ;;  %v1248_v14 = vld [vmem:[%s4553_s13 + $0x10] sm:$0xff] }
 0x132   : > { %v3766_v23 = vpop.eup %3765  ;;  %v3562_v25 = vpack.c.bf16 %v4031_v18, %v4033_v20 }
 0x133   : > { %v3768_v26 = vpop.eup %3767  ;;  %v4037_v27 = vmul.f32 %v3766_v23, %v886_v22  ;;  %vm1080_vm6 = vcmp.ge.s32.totalorder %v4071_v15, 2  ;;  %vm1087_vm7 = vcmp.ge.s32.totalorder %v4071_v15, 1  ;;  %vm1511_vm15 = vcmp.ge.s32.totalorder %v4071_v15, 4  ;;  %v3058_v15 = vld [vmem:[%s4549_s9 + $0x18] sm:$0xff] }
 0x134   : > { %3563 = vmatprep.subr.bf16.mxu1 %v3562_v25  ;;  %3619 = vmatprep.subr.bf16.mxu0 %v3562_v25  ;;  %v4039_v28 = vmul.f32 %v3768_v26, %v885_v24  ;;  %vm4075_vm8 = vmpackc.low %vm1080_vm6, %vm1080_vm6 }
 0x135   : > { %3565 = vmatpush3.bf16.msra.mxu1 %v3562_v25  ;;  %3621 = vmatpush3.bf16.msra.mxu0 %v3562_v25  ;;  %vm4079_vm9 = vmpackc.low %vm1087_vm7, %vm1087_vm7 }
 0x136   : > { %v3566_v29 = vpack.c.bf16 %v4037_v27, %v4039_v28  ;;  %vm4189_vm0 = vmpackc.low %vm1511_vm15, %vm1511_vm15 }
 0x138   : > { %3567 = vmatprep.subr.bf16.mxu1 %v3566_v29  ;;  %3623 = vmatprep.subr.bf16.mxu0 %v3566_v29 }
 0x139   : > { %3569 = vmatpush3.bf16.msra.mxu1 %v3566_v29  ;;  %3625 = vmatpush3.bf16.msra.mxu0 %v3566_v29 }
 0x13c   : > { %3357 = vmatmul.mubr.msk.f32.vlgmr.msra.gmra.mrb[0].mxu1 %vm705_vm2, %v920_v30  ;;  %v1091_v30 = vld [vmem:[%s4549_s9 + $0x8] sm:$0xff] }
 0x13d   : > { %3371 = vmatprep.mubr.msk.f32.mxu1 %vm1092_vm5, %v1090_v10 }
 0x20f   : > { %v3358_v32 = vpop.f32.mrb[0].mxu1 }
 0x210   : > { %vm1005_vm3 = vcmp.ge.f32.partialorder %v3358_v32, 0.0  ;;  %v1017_v34 = vmul.f32 %v3358_v32, %v1014_v31  ;;  %v993_v35 = vpop.f32.mrb[1].mxu1 }
 0x211   : > { %vm1004_vm4 = vcmp.ge.f32.partialorder %v993_v35, 0.0  ;;  %v1016_v36 = vmul.f32 %v1009_v33, %v993_v35 }
 0x212   : > { %v1019_v37 = vsel %vm1005_vm3, %v3358_v32, %v1017_v34 }
 0x213   : > { %1026 = vadd.xlane.f32.xlu1 %v1019_v37  ;;  %v1018_v38 = vsel %vm1004_vm4, %v993_v35, %v1016_v36  ;;  %v1029_v39 = vmul.f32 %v1019_v37, %v1019_v37 }
 0x214   : > { %1024 = vadd.xlane.f32.xlu0 %v1018_v38  ;;  %v1028_v40 = vmul.f32 %v1018_v38, %v1018_v38 }
 0x218   : > { %1032 = vadd.xlane.f32.xlu0 %v1029_v39 }
 0x21c   : > { %1030 = vadd.xlane.f32.xlu0 %v1028_v40 }
 0x224   : > { %1064 = vperm.xlu1 %3712, %v1022_v41   ;;  %v1194_v41 = vld [vmem:[%s4552_s12] sm:$0xff] }
 0x228   : > { %1069 = vperm.xlu1 %3712, %v1023_v42   ;;  %v1195_v42 = vld [vmem:[%s4552_s12 + $0x8] sm:$0xff] }
 0x232   : > { %1057 = vperm.xlu0 %3711, %v1021_v43   ;;  %v3052_v43 = vld [vmem:[%s4546_s6 + $0x18] sm:$0xff] }
 0x2a0   : > { %v1027_v45 = vpop.xlane.xlu1 %1026 }
 0x2a1   : > { %v1025_v46 = vpop.xlane.xlu0 %1024  ;;  %v1035_v47 = vmul.f32 0.0078125, %v1027_v45  ;;  %v1193_v45 = vld [vmem:[%s4551_s11 + $0x8] sm:$0xff] }
 0x2a2   : > { %v1034_v50 = vmul.f32 0.0078125, %v1025_v46  ;;  %v3051_v46 = vld [vmem:[%s4546_s6 + $0x10] sm:$0xff] }
 0x2a3   : > { %v1039_v49 = vmul.f32 %v1035_v47, %v1035_v47  ;;  %v1043_v59 = vsub.f32 %v1019_v37, %v1035_v47  ;;  %v1246_v47 = vld [vmem:[%s4553_s13] sm:$0xff] }
 0x2a4   : > { %v1038_v54 = vmul.f32 %v1034_v50, %v1034_v50  ;;  %v1065_v62 = vpop.permute.xlu1 %1064  ;;  %v1042_v63 = vsub.f32 %v1018_v38, %v1034_v50 }
 0x2a5   : > { %v1033_v48 = vpop.xlane.xlu0 %1032 }
 0x2a6   : > { %v1037_v51 = vmul.f32 0.0078125, %v1033_v48 }
 0x2a8   : > { %v1041_v52 = vsub.f32 %v1037_v51, %v1039_v49  ;;  %v1070_v5 = vpop.permute.xlu1 %1069 }
 0x2a9   : > { %v1031_v53 = vpop.xlane.xlu0 %1030 }
 0x2aa   : > { %v1045_v55 = vadd.f32 1e-05, %v1041_v52  ;;  %v1036_v56 = vmul.f32 0.0078125, %v1031_v53 }
 0x2ac   : > { %3769 = vrsqrt.f32 %v1045_v55  ;;  %v1040_v57 = vsub.f32 %v1036_v56, %v1038_v54 }
 0x2ae   : > { %v1044_v58 = vadd.f32 1e-05, %v1040_v57 }
 0x2b0   : > { %3771 = vrsqrt.f32 %v1044_v58 }
 0x2b1   : > { %v1058_v1 = vpop.permute.xlu0 %1057 }
 0x2b6   : > { %v3770_v60 = vpop.eup %3769 }
 0x2b7   : > { %v1049_v61 = vmul.f32 %v3770_v60, %v1043_v59 }
 0x2b9   : > { %v1061_v2 = vmul.f32 %v1058_v1, %v1049_v61 }
 0x2ba   : > { %v3772_v0 = vpop.eup %3771 }
 0x2bb   : > { %v1048_v3 = vmul.f32 %v3772_v0, %v1042_v63  ;;  %v1073_v6 = vadd.f32 %v1070_v5, %v1061_v2 }
 0x2bd   : > { %v1060_v4 = vmul.f32 %v1053_v44, %v1048_v3  ;;  %v3053_v44 = vld [vmem:[%s4547_s7 + $0x10] sm:$0xff] }
 0x2bf   : > { %v1072_v7 = vadd.f32 %v1065_v62, %v1060_v4 }
 0x2c1   : > { %v3718_v8 = vpack.i.bf16 %v1073_v6, %v1072_v7  ;;  %v3582_v9 = vpack.c.bf16 %v1073_v6, %v1072_v7 }
 0x2c3   : > { %3719 = vrot.lane.b32.xlu1 %v3718_v8, %s3810_s18  ;;  %3714 = vrot.lane.b32.xlu0 %v3718_v8, %s3811_s17 }
 0x2c7   : > { %1185 = vperm.xlu1 %3712, %v1175_v11   ;;  %1180 = vperm.xlu0 %3711, %v1174_v12  }
 0x2cb   : > { %1224 = vperm.xlu1 %3712, %v1192_v13   ;;  %v1247_v13 = vld [vmem:[%s4553_s13 + $0x8] sm:$0xff] }
 0x335   : > { %v3720_v16 = vpop.permute.xlu1 %3719  ;;  %v3715_v17 = vpop.permute.xlu0 %3714 }
 0x336   : > { %v3722_v19 = vunpack.i.h.bf16 %v3720_v16  ;;  %v3721_v21 = vunpack.i.l.bf16 %v3720_v16  ;;  %v3717_v22 = vunpack.i.h.bf16 %v3715_v17  ;;  %v3716_v23 = vunpack.i.l.bf16 %v3715_v17  ;;  %v1249_v16 = vld [vmem:[%s4553_s13 + $0x18] sm:$0xff]  ;;  %v3047_v17 = vld [vmem:[%s4545_s5 + $0x10] sm:$0xff] }
 0x338   : > { %v3570_v25 = vpack.c.bf16 %v3717_v22, %v3716_v23  ;;  %v3576_v29 = vpack.c.bf16 %v3722_v19, %v3721_v21 }
 0x33a   : > { %3572 = vmatprep.subr.msk.bf16.mxu1 %vm4075_vm8, %v3570_v25 }
 0x33b   : > { %3575 = vmatpush3.bf16.msk.msra.mxu1 %vm4075_vm8, %v3570_v25 }
 0x33c   : > { %3578 = vmatprep.subr.msk.bf16.mxu1 %vm4079_vm9, %v3576_v29 }
 0x33f   : > { %3581 = vmatpush3.bf16.msk.msra.mxu1 %vm4079_vm9, %v3576_v29 }
 0x340   : > { %3583 = vmatprep.subr.bf16.mxu1 %v3582_v9 }
 0x343   : > { %3585 = vmatpush3.bf16.msra.mxu1 %v3582_v9 }
 0x346   : > { %3372 = vmatmul.mubr.msk.f32.vlgmr.msra.gmra.mrb[2].mxu1 %vm1092_vm5, %v1091_v30  ;;  %v1186_v31 = vpop.permute.xlu1 %1185  ;;  %v1181_v33 = vpop.permute.xlu0 %1180 }
 0x347   : > { %3378 = vmatprep.mubr.msk.f32.mxu1 %vm1250_vm12, %v1246_v47  ;;  %v3055_v47 = vld [vmem:[%s4548_s8 + $0x10] sm:$0xff] }
 0x34a   : > { %v1225_v48 = vpop.permute.xlu1 %1224 }
 0x419   : > { %v3373_v32 = vpop.f32.mrb[2].mxu1 }
 0x41a   : > { %vm1177_vm10 = vcmp.ge.f32.partialorder %v3373_v32, 0.0  ;;  %v1189_v34 = vmul.f32 %v3373_v32, %v1186_v31  ;;  %v1165_v35 = vpop.f32.mrb[3].mxu1 }
 0x41b   : > { %vm1176_vm11 = vcmp.ge.f32.partialorder %v1165_v35, 0.0  ;;  %v1188_v36 = vmul.f32 %v1181_v33, %v1165_v35 }
 0x41c   : > { %v1191_v37 = vsel %vm1177_vm10, %v3373_v32, %v1189_v34  ;;  %v3048_v34 = vld [vmem:[%s4545_s5 + $0x18] sm:$0xff] }
 0x41d   : > { %1198 = vadd.xlane.f32.xlu1 %v1191_v37  ;;  %v1190_v38 = vsel %vm1176_vm11, %v1165_v35, %v1188_v36  ;;  %v1201_v39 = vmul.f32 %v1191_v37, %v1191_v37  ;;  %v3079_v35 = vld [vmem:[%s4545_s5 + $0x20] sm:$0xff]  ;;  %v3080_v36 = vld [vmem:[%s4545_s5 + $0x28] sm:$0xff] }
 0x41e   : > { %1196 = vadd.xlane.f32.xlu0 %v1190_v38  ;;  %v1200_v40 = vmul.f32 %v1190_v38, %v1190_v38  ;;  %3428 = vmatprep.mubr.msk.f32.mxu0 %vm705_vm2, %v3079_v35 }
 0x41f   : > { %3429 = vmatmul.mubr.msk.f32.vlgmr.msra.gmra.mrb[8].mxu0 %vm705_vm2, %v3080_v36 }
 0x422   : > { %1204 = vadd.xlane.f32.xlu0 %v1201_v39 }
 0x426   : > { %1202 = vadd.xlane.f32.xlu0 %v1200_v40 }
 0x42e   : > { %1236 = vperm.xlu1 %3712, %v1194_v41  }
 0x432   : > { %1241 = vperm.xlu1 %3712, %v1195_v42  }
 0x436   : > { %1444 = vperm.xlu1 %3712, %v3052_v43  }
 0x43a   : > { %1485 = vperm.xlu1 %3712, %v3053_v44  }
 0x43c   : > { %1229 = vperm.xlu0 %3711, %v1193_v45  }
 0x440   : > { %1439 = vperm.xlu0 %3711, %v3051_v46  }
 0x4aa   : > { %v1199_v49 = vpop.xlane.xlu1 %1198 }
 0x4ab   : > { %v1197_v50 = vpop.xlane.xlu0 %1196  ;;  %v1207_v51 = vmul.f32 0.0078125, %v1199_v49  ;;  %v3054_v49 = vld [vmem:[%s4547_s7 + $0x18] sm:$0xff] }
 0x4ac   : > { %v1206_v54 = vmul.f32 0.0078125, %v1197_v50 }
 0x4ad   : > { %v1211_v53 = vmul.f32 %v1207_v51, %v1207_v51  ;;  %v1215_v63 = vsub.f32 %v1191_v37, %v1207_v51 }
 0x4ae   : > { %v1210_v58 = vmul.f32 %v1206_v54, %v1206_v54  ;;  %v1237_v2 = vpop.permute.xlu1 %1236  ;;  %v1214_v3 = vsub.f32 %v1190_v38, %v1206_v54 }
 0x4af   : > { %v1205_v52 = vpop.xlane.xlu0 %1204 }
 0x4b0   : > { %v1209_v55 = vmul.f32 0.0078125, %v1205_v52 }
 0x4b2   : > { %v1213_v56 = vsub.f32 %v1209_v55, %v1211_v53  ;;  %v1242_v9 = vpop.permute.xlu1 %1241 }
 0x4b3   : > { %v1203_v57 = vpop.xlane.xlu0 %1202 }
 0x4b4   : > { %v1217_v59 = vadd.f32 1e-05, %v1213_v56  ;;  %v1208_v60 = vmul.f32 0.0078125, %v1203_v57 }
 0x4b6   : > { %3773 = vrsqrt.f32 %v1217_v59  ;;  %v1212_v61 = vsub.f32 %v1208_v60, %v1210_v58  ;;  %v1445_v37 = vpop.permute.xlu1 %1444 }
 0x4b8   : > { %v1216_v62 = vadd.f32 1e-05, %v1212_v61 }
 0x4ba   : > { %3775 = vrsqrt.f32 %v1216_v62  ;;  %v1486_v50 = vpop.permute.xlu1 %1485 }
 0x4bb   : > { %v1230_v5 = vpop.permute.xlu0 %1229 }
 0x4bf   : > { %v1440_v39 = vpop.permute.xlu0 %1439 }
 0x4c0   : > { %v3774_v0 = vpop.eup %3773 }
 0x4c1   : > { %v1221_v1 = vmul.f32 %v3774_v0, %v1215_v63 }
 0x4c3   : > { %v1233_v6 = vmul.f32 %v1230_v5, %v1221_v1 }
 0x4c4   : > { %v3776_v4 = vpop.eup %3775 }
 0x4c5   : > { %v1220_v7 = vmul.f32 %v3776_v4, %v1214_v3  ;;  %v1245_v10 = vadd.f32 %v1242_v9, %v1233_v6 }
 0x4c7   : > { %v1232_v8 = vmul.f32 %v1225_v48, %v1220_v7  ;;  %v3056_v48 = vld [vmem:[%s4548_s8 + $0x18] sm:$0xff] }
 0x4c9   : > { %v1244_v11 = vadd.f32 %v1237_v2, %v1232_v8 }
 0x4cb   : > { %v3586_v12 = vpack.c.bf16 %v1245_v10, %v1244_v11 }
 0x4cd   : > { %3587 = vmatprep.subr.bf16.mxu1 %v3586_v12 }
 0x4ce   : > { %3589 = vmatpush3.bf16.msra.mxu1 %v3586_v12 }
 0x4d1   : > { %3379 = vmatmul.mubr.msk.f32.vlgmr.msra.gmra.mrb[4].mxu1 %vm1250_vm12, %v1247_v13 }
 0x4d2   : > { %3381 = vmatprep.mubr.msk.f32.mxu1 %vm1250_vm12, %v1248_v14 }
 0x4d5   : > { %3382 = vmatmul.mubr.msk.f32.gmra.mrb[6].mxu1 %vm1250_vm12, %v1249_v16 }
 0x4d6   : > { %3392 = vmatprep.mubr.msk.f32.mxu1 %vm705_vm2, %v3047_v17  ;;  %v3057_v17 = vld [vmem:[%s4549_s9 + $0x10] sm:$0xff] }
 0x5a4   : > { %v3380_v19 = vpop.f32.mrb[4].mxu1 }
 0x5a5   : > { %v4134_v21 = vadd.f32 %v3380_v19, %v4031_v18  ;;  %v1329_v22 = vpop.f32.mrb[5].mxu1  ;;  %v3430_v19 = vpop.f32.mrb[8].mxu0 }
 0x5a6   : > { %v4137_v23 = vadd.f32 %v1329_v22, %v4033_v20  ;;  %v3084_v22 = vld [vmem:[%s4546_s6 + $0x28] sm:$0xff]  ;;  %vm1869_vm1 = vcmp.ge.f32.partialorder %v3430_v19, 0.0 }
 0x5a8   : > { %v3590_v25 = vpack.c.bf16 %v4134_v21, %v4137_v23  ;;  %v3383_v29 = vpop.f32.mrb[6].mxu1 }
 0x5a9   : > { %v4142_v30 = vadd.f32 %v3383_v29, %v4037_v27  ;;  %v1339_v31 = vpop.f32.mrb[7].mxu1  ;;  %v1856_v29 = vpop.f32.mrb[9].mxu0 }
 0x5aa   : > { %v4145_v32 = vadd.f32 %v1339_v31, %v4039_v28  ;;  %3591 = vmatprep.subr.bf16.mxu1 %v3590_v25  ;;  %v3066_v31 = vld [vmem:[%s4550_s10 + $0x18] sm:$0xff]  ;;  %vm1868_vm3 = vcmp.ge.f32.partialorder %v1856_v29, 0.0 }
 0x5ab   : > { %3593 = vmatpush3.bf16.msra.mxu1 %v3590_v25  ;;  %v3083_v25 = vld [vmem:[%s4546_s6 + $0x20] sm:$0xff] }
 0x5ac   : > { %v3594_v33 = vpack.c.bf16 %v4142_v30, %v4145_v32 }
 0x5ae   : > { %3595 = vmatprep.subr.bf16.mxu1 %v3594_v33 }
 0x5af   : > { %3597 = vmatpush3.bf16.msra.mxu1 %v3594_v33  ;;  %v3065_v33 = vld [vmem:[%s4550_s10 + $0x10] sm:$0xff] }
 0x5b2   : > { %3393 = vmatmul.mubr.msk.f32.vlgmr.msra.gmra.mrb[8].mxu1 %vm705_vm2, %v3048_v34 }
 0x5b3   : > { %3407 = vmatprep.mubr.msk.f32.mxu1 %vm1092_vm5, %v3057_v17 }
 0x685   : > { %v3394_v38 = vpop.f32.mrb[8].mxu1 }
 0x686   : > { %vm1436_vm13 = vcmp.ge.f32.partialorder %v3394_v38, 0.0  ;;  %v1448_v40 = vmul.f32 %v3394_v38, %v1445_v37  ;;  %v1423_v41 = vpop.f32.mrb[9].mxu1 }
 0x687   : > { %vm1435_vm14 = vcmp.ge.f32.partialorder %v1423_v41, 0.0  ;;  %v1447_v42 = vmul.f32 %v1440_v39, %v1423_v41 }
 0x688   : > { %v1450_v43 = vsel %vm1436_vm13, %v3394_v38, %v1448_v40 }
 0x689   : > { %1459 = vadd.xlane.f32.xlu1 %v1450_v43  ;;  %v1449_v44 = vsel %vm1435_vm14, %v1423_v41, %v1447_v42  ;;  %v1462_v45 = vmul.f32 %v1450_v43, %v1450_v43 }
 0x68a   : > { %1457 = vadd.xlane.f32.xlu0 %v1449_v44  ;;  %v1461_v46 = vmul.f32 %v1449_v44, %v1449_v44 }
 0x68e   : > { %1465 = vadd.xlane.f32.xlu0 %v1462_v45 }
 0x692   : > { %1463 = vadd.xlane.f32.xlu0 %v1461_v46 }
 0x69a   : > { %1497 = vperm.xlu1 %3712, %v3055_v47  }
 0x69e   : > { %1502 = vperm.xlu1 %3712, %v3056_v48  }
 0x6a8   : > { %1490 = vperm.xlu0 %3711, %v3054_v49  }
 0x716   : > { %v1460_v51 = vpop.xlane.xlu1 %1459 }
 0x717   : > { %v1458_v52 = vpop.xlane.xlu0 %1457  ;;  %v1468_v53 = vmul.f32 0.0078125, %v1460_v51  ;;  %v3085_v51 = vld [vmem:[%s4547_s7 + $0x20] sm:$0xff] }
 0x718   : > { %v1467_v56 = vmul.f32 0.0078125, %v1458_v52  ;;  %v3087_v52 = vld [vmem:[%s4548_s8 + $0x20] sm:$0xff] }
 0x719   : > { %v1472_v55 = vmul.f32 %v1468_v53, %v1468_v53  ;;  %v1476_v1 = vsub.f32 %v1450_v43, %v1468_v53  ;;  %v3088_v53 = vld [vmem:[%s4548_s8 + $0x28] sm:$0xff] }
 0x71a   : > { %v1471_v60 = vmul.f32 %v1467_v56, %v1467_v56  ;;  %v1498_v4 = vpop.permute.xlu1 %1497  ;;  %v1475_v5 = vsub.f32 %v1449_v44, %v1467_v56 }
 0x71b   : > { %v1466_v54 = vpop.xlane.xlu0 %1465 }
 0x71c   : > { %v1470_v57 = vmul.f32 0.0078125, %v1466_v54  ;;  %v3067_v54 = vld [vmem:[%s4551_s11 + $0x10] sm:$0xff] }
 0x71e   : > { %v1474_v58 = vsub.f32 %v1470_v57, %v1472_v55  ;;  %v1503_v11 = vpop.permute.xlu1 %1502  ;;  %v3086_v55 = vld [vmem:[%s4547_s7 + $0x28] sm:$0xff] }
 0x71f   : > { %v1464_v59 = vpop.xlane.xlu0 %1463 }
 0x720   : > { %v1478_v61 = vadd.f32 1e-05, %v1474_v58  ;;  %v1469_v62 = vmul.f32 0.0078125, %v1464_v59 }
 0x722   : > { %3777 = vrsqrt.f32 %v1478_v61  ;;  %v1473_v63 = vsub.f32 %v1469_v62, %v1471_v60 }
 0x724   : > { %v1477_v0 = vadd.f32 1e-05, %v1473_v63 }
 0x726   : > { %3779 = vrsqrt.f32 %v1477_v0 }
 0x727   : > { %v1491_v7 = vpop.permute.xlu0 %1490 }
 0x72c   : > { %v3778_v2 = vpop.eup %3777 }
 0x72d   : > { %v1482_v3 = vmul.f32 %v3778_v2, %v1476_v1 }
 0x72f   : > { %v1494_v8 = vmul.f32 %v1491_v7, %v1482_v3 }
 0x730   : > { %v3780_v6 = vpop.eup %3779 }
 0x731   : > { %v1481_v9 = vmul.f32 %v3780_v6, %v1475_v5  ;;  %v1506_v12 = vadd.f32 %v1503_v11, %v1494_v8 }
 0x733   : > { %v1493_v10 = vmul.f32 %v1486_v50, %v1481_v9 }
 0x735   : > { %v1505_v13 = vadd.f32 %v1498_v4, %v1493_v10 }
 0x737   : > { %v3728_v14 = vpack.i.bf16 %v1506_v12, %v1505_v13  ;;  %v3610_v16 = vpack.c.bf16 %v1506_v12, %v1505_v13 }
 0x739   : > { %3729 = vrot.lane.b32.xlu1 %v3728_v14, %s3811_s17  ;;  %3724 = vrot.lane.b32.xlu0 %v3728_v14, %s3812_s19 }
 0x73d   : > { %1877 = vperm.xlu1 %3712, %v3084_v22   ;;  %1872 = vperm.xlu0 %3711, %v3083_v25  }
 0x741   : > { %1616 = vperm.xlu1 %3712, %v3066_v31   ;;  %1611 = vperm.xlu0 %3711, %v3065_v33  }
 0x7ab   : > { %v3730_v34 = vpop.permute.xlu1 %3729  ;;  %v3725_v35 = vpop.permute.xlu0 %3724 }
 0x7ac   : > { %v3732_v36 = vunpack.i.h.bf16 %v3730_v34  ;;  %v3731_v37 = vunpack.i.l.bf16 %v3730_v34  ;;  %v3727_v38 = vunpack.i.h.bf16 %v3725_v35  ;;  %v3726_v39 = vunpack.i.l.bf16 %v3725_v35 }
 0x7ae   : > { %v3598_v41 = vpack.c.bf16 %v3727_v38, %v3726_v39  ;;  %v3604_v42 = vpack.c.bf16 %v3732_v36, %v3731_v37 }
 0x7b0   : > { %3600 = vmatprep.subr.msk.bf16.mxu1 %vm4189_vm0, %v3598_v41 }
 0x7b1   : > { %3603 = vmatpush3.bf16.msk.msra.mxu1 %vm4189_vm0, %v3598_v41 }
 0x7b2   : > { %3606 = vmatprep.subr.msk.bf16.mxu1 %vm4075_vm8, %v3604_v42 }
 0x7b5   : > { %3609 = vmatpush3.bf16.msk.msra.mxu1 %vm4075_vm8, %v3604_v42 }
 0x7b6   : > { %3611 = vmatprep.subr.bf16.mxu1 %v3610_v16 }
 0x7b9   : > { %3613 = vmatpush3.bf16.msra.mxu1 %v3610_v16 }
 0x7bc   : > { %v1878_v43 = vpop.permute.xlu1 %1877  ;;  %v1873_v44 = vpop.permute.xlu0 %1872  ;;  %3408 = vmatmul.mubr.msk.f32.vlgmr.msra.gmra.mrb[10].mxu1 %vm1092_vm5, %v3058_v15  ;;  %v3069_v15 = vld [vmem:[%s4552_s12 + $0x10] sm:$0xff] }
 0x7bd   : > { %v1881_v45 = vmul.f32 %v3430_v19, %v1878_v43  ;;  %v1880_v46 = vmul.f32 %v1873_v44, %v1856_v29  ;;  %v3070_v43 = vld [vmem:[%s4552_s12 + $0x18] sm:$0xff] }
 0x7bf   : > { %v1883_v47 = vsel %vm1869_vm1, %v3430_v19, %v1881_v45  ;;  %v1882_v48 = vsel %vm1868_vm3, %v1856_v29, %v1880_v46  ;;  %v3098_v45 = vld [vmem:[%s4550_s10 + $0x28] sm:$0xff]  ;;  %v3068_v46 = vld [vmem:[%s4551_s11 + $0x18] sm:$0xff] }
 0x7c0   : > { %1892 = vadd.xlane.f32.xlu1 %v1883_v47  ;;  %1890 = vadd.xlane.f32.xlu0 %v1882_v48  ;;  %v1894_v49 = vmul.f32 %v1882_v48, %v1882_v48  ;;  %v1895_v50 = vmul.f32 %v1883_v47, %v1883_v47  ;;  %v1612_v56 = vpop.permute.xlu0 %1611  ;;  %v1617_v57 = vpop.permute.xlu1 %1616 }
 0x7c4   : > { %1896 = vadd.xlane.f32.xlu0 %v1894_v49  ;;  %v3071_v49 = vld [vmem:[%s4553_s13 + $0x20] sm:$0xff] }
 0x7c5   : > { %3414 = vmatprep.mubr.msk.f32.mxu1 %vm1250_vm12, %v3071_v49 }
 0x7c8   : > { %1898 = vadd.xlane.f32.xlu0 %v1895_v50 }
 0x7d1   : > { %1918 = vperm.xlu1 %3712, %v3085_v51  }
 0x7d5   : > { %1930 = vperm.xlu1 %3712, %v3087_v52  }
 0x7d9   : > { %1935 = vperm.xlu1 %3712, %v3088_v53  }
 0x7dd   : > { %1657 = vperm.xlu1 %3712, %v3067_v54  }
 0x7de   : > { %1923 = vperm.xlu0 %3711, %v3086_v55  }
 0x84d   : > { %v1891_v58 = vpop.xlane.xlu0 %1890  ;;  %v1893_v60 = vpop.xlane.xlu1 %1892 }
 0x84e   : > { %v1900_v59 = vmul.f32 0.0078125, %v1891_v58  ;;  %v1901_v62 = vmul.f32 0.0078125, %v1893_v60 }
 0x850   : > { %v1904_v63 = vmul.f32 %v1900_v59, %v1900_v59  ;;  %v1905_v3 = vmul.f32 %v1901_v62, %v1901_v62  ;;  %v1908_v9 = vsub.f32 %v1882_v48, %v1900_v59  ;;  %v1909_v13 = vsub.f32 %v1883_v47, %v1901_v62  ;;  %v3099_v47 = vld [vmem:[%s4551_s11 + $0x20] sm:$0xff] }
 0x851   : > { %v1897_v61 = vpop.xlane.xlu0 %1896  ;;  %v1919_v8 = vpop.permute.xlu1 %1918  ;;  %v3097_v48 = vld [vmem:[%s4550_s10 + $0x20] sm:$0xff] }
 0x852   : > { %v1902_v0 = vmul.f32 0.0078125, %v1897_v61 }
 0x854   : > { %v1906_v1 = vsub.f32 %v1902_v0, %v1904_v63 }
 0x855   : > { %v1899_v2 = vpop.xlane.xlu0 %1898  ;;  %v1931_v12 = vpop.permute.xlu1 %1930 }
 0x856   : > { %v1910_v4 = vadd.f32 1e-05, %v1906_v1  ;;  %v1903_v5 = vmul.f32 0.0078125, %v1899_v2 }
 0x858   : > { %3781 = vrsqrt.f32 %v1910_v4  ;;  %v1907_v6 = vsub.f32 %v1903_v5, %v1905_v3 }
 0x859   : > { %v1936_v25 = vpop.permute.xlu1 %1935 }
 0x85a   : > { %v1911_v7 = vadd.f32 1e-05, %v1907_v6 }
 0x85c   : > { %3783 = vrsqrt.f32 %v1911_v7 }
 0x85d   : > { %v1924_v19 = vpop.permute.xlu0 %1923  ;;  %v1658_v50 = vpop.permute.xlu1 %1657 }
 0x862   : > { %v3782_v10 = vpop.eup %3781 }
 0x863   : > { %v1914_v11 = vmul.f32 %v3782_v10, %v1908_v9 }
 0x865   : > { %v1926_v16 = vmul.f32 %v1919_v8, %v1914_v11 }
 0x866   : > { %v3784_v14 = vpop.eup %3783 }
 0x867   : > { %v1915_v17 = vmul.f32 %v3784_v14, %v1909_v13  ;;  %v1938_v29 = vadd.f32 %v1931_v12, %v1926_v16 }
 0x869   : > { %v1927_v22 = vmul.f32 %v1924_v19, %v1915_v17 }
 0x86b   : > { %v1939_v31 = vadd.f32 %v1936_v25, %v1927_v22 }
 0x86d   : > { %v4220_v33 = vpack.c.bf16 %v1939_v31, %v1938_v29  ;;  %v3738_v44 = vpack.i.bf16 %v1939_v31, %v1938_v29 }
 0x88f   : > { %v3409_v34 = vpop.f32.mrb[10].mxu1 }
 0x890   : > { %vm1608_vm4 = vcmp.ge.f32.partialorder %v3409_v34, 0.0  ;;  %v1620_v35 = vmul.f32 %v3409_v34, %v1617_v57  ;;  %v1595_v36 = vpop.f32.mrb[11].mxu1 }
 0x891   : > { %vm1607_vm6 = vcmp.ge.f32.partialorder %v1595_v36, 0.0  ;;  %v1619_v37 = vmul.f32 %v1612_v56, %v1595_v36 }
 0x892   : > { %v1622_v38 = vsel %vm1608_vm4, %v3409_v34, %v1620_v35  ;;  %v3072_v34 = vld [vmem:[%s4553_s13 + $0x28] sm:$0xff]  ;;  %v3073_v35 = vld [vmem:[%s4553_s13 + $0x30] sm:$0xff] }
 0x893   : > { %1631 = vadd.xlane.f32.xlu1 %v1622_v38  ;;  %v1621_v39 = vsel %vm1607_vm6, %v1595_v36, %v1619_v37  ;;  %v1634_v41 = vmul.f32 %v1622_v38, %v1622_v38  ;;  %v3074_v37 = vld [vmem:[%s4553_s13 + $0x38] sm:$0xff] }
 0x894   : > { %1629 = vadd.xlane.f32.xlu0 %v1621_v39  ;;  %v1633_v42 = vmul.f32 %v1621_v39, %v1621_v39 }
 0x898   : > { %1637 = vadd.xlane.f32.xlu0 %v1634_v41 }
 0x89c   : > { %1635 = vadd.xlane.f32.xlu0 %v1633_v42 }
 0x8a4   : > { %1669 = vperm.xlu1 %3712, %v3069_v15  }
 0x8a8   : > { %1674 = vperm.xlu1 %3712, %v3070_v43  }
 0x8ac   : > { %3739 = vrot.lane.b32.xlu1 %v3738_v44, %s3810_s18  ;;  %s3695_s18 = smul.u32 80, %s4566_s22 }
 0x8ae   : > { %s4497_s29 = scalar_lea.vmem %s4556_s16, %s3695_s18 }
 0x8b0   : > { %2048 = vperm.xlu1 %3712, %v3098_v45  }
 0x8b2   : > { %1662 = vperm.xlu0 %3711, %v3068_v46  }
 0x8b4   : > { %2089 = vperm.xlu1 %3712, %v3099_v47  }
 0x8b6   : > { %3734 = vrot.lane.b32.xlu0 %v3738_v44, %s3811_s17 }
 0x8ba   : > { %2043 = vperm.xlu0 %3711, %v3097_v48  }
 0x920   : > { %v1632_v51 = vpop.xlane.xlu1 %1631 }
 0x921   : > { %v1630_v52 = vpop.xlane.xlu0 %1629  ;;  %v1640_v53 = vmul.f32 0.0078125, %v1632_v51 }
 0x922   : > { %v1639_v56 = vmul.f32 0.0078125, %v1630_v52 }
 0x923   : > { %v1644_v55 = vmul.f32 %v1640_v53, %v1640_v53  ;;  %v1648_v2 = vsub.f32 %v1622_v38, %v1640_v53  ;;  %v3089_v38 = vld [vmem:[%s4549_s9 + $0x20] sm:$0xff] }
 0x924   : > { %v1643_v60 = vmul.f32 %v1639_v56, %v1639_v56  ;;  %v1670_v1 = vpop.permute.xlu1 %1669  ;;  %v1647_v6 = vsub.f32 %v1621_v39, %v1639_v56  ;;  %v3090_v39 = vld [vmem:[%s4549_s9 + $0x28] sm:$0xff]  ;;  %v3116_v56 = vld [vmem:[%s4546_s6 + $0x38] sm:$0xff] }
 0x925   : > { %v1638_v54 = vpop.xlane.xlu0 %1637 }
 0x926   : > { %v1642_v57 = vmul.f32 0.0078125, %v1638_v54 }
 0x928   : > { %v1646_v58 = vsub.f32 %v1642_v57, %v1644_v55  ;;  %v1675_v8 = vpop.permute.xlu1 %1674  ;;  %v3102_v55 = vld [vmem:[%s4552_s12 + $0x28] sm:$0xff]  ;;  %v3117_v57 = vld [vmem:[%s4547_s7 + $0x30] sm:$0xff] }
 0x929   : > { %v1636_v59 = vpop.xlane.xlu0 %1635 }
 0x92a   : > { %v1650_v61 = vadd.f32 1e-05, %v1646_v58  ;;  %v1641_v62 = vmul.f32 0.0078125, %v1636_v59  ;;  %v3100_v58 = vld [vmem:[%s4551_s11 + $0x28] sm:$0xff]  ;;  %v3115_v59 = vld [vmem:[%s4546_s6 + $0x30] sm:$0xff] }
 0x92c   : > { %3785 = vrsqrt.f32 %v1650_v61  ;;  %v1645_v63 = vsub.f32 %v1641_v62, %v1643_v60  ;;  %v3740_v19 = vpop.permute.xlu1 %3739  ;;  %v3103_v60 = vld [vmem:[%s4553_s13 + $0x40] sm:$0xff] }
 0x92d   : > { %v3742_v25 = vunpack.i.h.bf16 %v3740_v19  ;;  %v3741_v29 = vunpack.i.l.bf16 %v3740_v19  ;;  %3450 = vmatprep.mubr.msk.f32.mxu0 %vm1250_vm12, %v3103_v60  ;;  %v3120_v60 = vld [vmem:[%s4548_s8 + $0x38] sm:$0xff] }
 0x92e   : > { %v1649_v0 = vadd.f32 1e-05, %v1645_v63 }
 0x92f   : > { %v3632_v36 = vpack.c.bf16 %v3742_v25, %v3741_v29 }
 0x930   : > { %3787 = vrsqrt.f32 %v1649_v0 }
 0x931   : > { %v1663_v4 = vpop.permute.xlu0 %1662 }
 0x935   : > { %v3735_v11 = vpop.permute.xlu0 %3734 }
 0x936   : > { %v3786_v3 = vpop.eup %3785  ;;  %v3737_v14 = vunpack.i.h.bf16 %v3735_v11  ;;  %v3736_v16 = vunpack.i.l.bf16 %v3735_v11 }
 0x937   : > { %v1654_v5 = vmul.f32 %v3786_v3, %v1648_v2 }
 0x938   : > { %v3626_v31 = vpack.c.bf16 %v3737_v14, %v3736_v16 }
 0x939   : > { %v1666_v9 = vmul.f32 %v1663_v4, %v1654_v5  ;;  %v2044_v49 = vpop.permute.xlu0 %2043 }
 0x93a   : > { %v3788_v7 = vpop.eup %3787 }
 0x93b   : > { %v1653_v10 = vmul.f32 %v3788_v7, %v1647_v6  ;;  %v1678_v13 = vadd.f32 %v1675_v8, %v1666_v9 }
 0x93d   : > { %v1665_v12 = vmul.f32 %v1658_v50, %v1653_v10 }
 0x93f   : > { %v1677_v17 = vadd.f32 %v1670_v1, %v1665_v12 }
 0x941   : > { %v3614_v22 = vpack.c.bf16 %v1678_v13, %v1677_v17 }
 0x943   : > { %3615 = vmatprep.subr.bf16.mxu1 %v3614_v22 }
 0x944   : > { %3617 = vmatpush3.bf16.msra.mxu1 %v3614_v22 }
 0x945   : > { %3628 = vmatprep.subr.msk.bf16.mxu1 %vm4075_vm8, %v3626_v31 }
 0x947   : > { %3415 = vmatmul.mubr.msk.f32.vlgmr.msra.gmra.mrb[12].mxu1 %vm1250_vm12, %v3072_v34 }
 0x948   : > { %3631 = vmatpush3.bf16.msk.msra.mxu1 %vm4075_vm8, %v3626_v31  ;;  %3417 = vmatprep.mubr.msk.f32.mxu1 %vm1250_vm12, %v3073_v35 }
 0x949   : > { %3634 = vmatprep.subr.msk.bf16.mxu1 %vm4079_vm9, %v3632_v36 }
 0x94b   : > { %3418 = vmatmul.mubr.msk.f32.gmra.mrb[14].mxu1 %vm1250_vm12, %v3074_v37 }
 0x94c   : > { %3637 = vmatpush3.bf16.msk.msra.mxu1 %vm4079_vm9, %v3632_v36  ;;  %3443 = vmatprep.mubr.msk.f32.mxu1 %vm1092_vm5, %v3089_v38  ;;  %v3104_v38 = vld [vmem:[%s4553_s13 + $0x48] sm:$0xff] }
 0x94d   : > { %3639 = vmatprep.subr.bf16.mxu1 %v4220_v33 }
 0x950   : > { %3641 = vmatpush3.bf16.msra.mxu1 %v4220_v33 }
 0x953   : > { %3444 = vmatmul.mubr.msk.f32.vlgmr.msra.gmra.mrb[16].mxu1 %vm1092_vm5, %v3090_v39  ;;  %v3105_v39 = vld [vmem:[%s4553_s13 + $0x50] sm:$0xff] }
 0xa1a   : > { %v3416_v41 = vpop.f32.mrb[12].mxu1 }
 0xa1b   : > { %v4277_v42 = vadd.f32 %v3416_v41, %v4134_v21  ;;  %v1762_v15 = vpop.f32.mrb[13].mxu1  ;;  %v2049_v21 = vpop.permute.xlu1 %2048  ;;  %v3106_v41 = vld [vmem:[%s4553_s13 + $0x58] sm:$0xff] }
 0xa1c   : > { %v4280_v26 = vadd.f32 %v1762_v15, %v4137_v23  ;;  %v3111_v15 = vld [vmem:[%s4545_s5 + $0x30] sm:$0xff] }
 0xa1e   : > { %v3675_v43 = vpack.c.bf16 %v4277_v42, %v4280_v26  ;;  %v3419_v44 = vpop.f32.mrb[14].mxu1  ;;  %v2645_v42 = vld [vmem:[%s4554_s14] sm:$0xff]  ;;  %v2646_v26 = vld [vmem:[%s4554_s14 + $0x8] sm:$0xff] }
 0xa1f   : > { %v4285_v33 = vadd.f32 %v3419_v44, %v4142_v30  ;;  %v1772_v45 = vpop.f32.mrb[15].mxu1  ;;  %v2090_v61 = vpop.permute.xlu1 %2089 }
 0xa20   : > { %v4288_v46 = vadd.f32 %v1772_v45, %v4145_v32  ;;  %v3101_v32 = vld [vmem:[%s4552_s12 + $0x20] sm:$0xff] }
 0xa22   : > { %v3678_v47 = vpack.c.bf16 %v4285_v33, %v4288_v46  ;;  %v2648_v33 = vld [vmem:[%s4554_s14 + $0x18] sm:$0xff]  ;;  %v2649_v46 = vld [vmem:[%s4554_s14 + $0x20] sm:$0x1] }
 0xa26   : > { %v3445_v48 = vpop.f32.mrb[16].mxu1 }
 0xa27   : > { %vm2040_vm7 = vcmp.ge.f32.partialorder %v3445_v48, 0.0  ;;  %v2052_v23 = vmul.f32 %v3445_v48, %v2049_v21  ;;  %v2027_v50 = vpop.f32.mrb[17].mxu1 }
 0xa28   : > { %vm2039_vm9 = vcmp.ge.f32.partialorder %v2027_v50, 0.0  ;;  %v2051_v51 = vmul.f32 %v2044_v49, %v2027_v50 }
 0xa29   : > { %v2054_v52 = vsel %vm2040_vm7, %v3445_v48, %v2052_v23 }
 0xa2a   : > { %2063 = vadd.xlane.f32.xlu1 %v2054_v52  ;;  %v2053_v53 = vsel %vm2039_vm9, %v2027_v50, %v2051_v51  ;;  %v2066_v30 = vmul.f32 %v2054_v52, %v2054_v52 }
 0xa2b   : > { %2061 = vadd.xlane.f32.xlu0 %v2053_v53  ;;  %v2065_v54 = vmul.f32 %v2053_v53, %v2053_v53 }
 0xa2f   : > { %2069 = vadd.xlane.f32.xlu0 %v2066_v30 }
 0xa33   : > { %2067 = vadd.xlane.f32.xlu0 %v2065_v54 }
 0xa3b   : > { %2101 = vperm.xlu1 %3712, %v3101_v32  }
 0xa3f   : > { %2106 = vperm.xlu1 %3712, %v3102_v55  }
 0xa43   : > { %2309 = vperm.xlu1 %3712, %v3116_v56  }
 0xa47   : > { %2350 = vperm.xlu1 %3712, %v3117_v57  }
 0xa49   : > { %2094 = vperm.xlu0 %3711, %v3100_v58  }
 0xa4d   : > { %2304 = vperm.xlu0 %3711, %v3115_v59   ;;  %v3119_v59 = vld [vmem:[%s4548_s8 + $0x30] sm:$0xff] }
 0xab7   : > { %v2064_v62 = vpop.xlane.xlu1 %2063 }
 0xab8   : > { %v2062_v63 = vpop.xlane.xlu0 %2061  ;;  %v2072_v0 = vmul.f32 0.0078125, %v2064_v62 }
 0xab9   : > { %v2071_v3 = vmul.f32 0.0078125, %v2062_v63 }
 0xaba   : > { %v2076_v2 = vmul.f32 %v2072_v0, %v2072_v0  ;;  %v2080_v12 = vsub.f32 %v2054_v52, %v2072_v0 }
 0xabb   : > { %v2075_v7 = vmul.f32 %v2071_v3, %v2071_v3  ;;  %v2102_v16 = vpop.permute.xlu1 %2101  ;;  %v2079_v17 = vsub.f32 %v2053_v53, %v2071_v3 }
 0xabc   : > { %v2070_v1 = vpop.xlane.xlu0 %2069 }
 0xabd   : > { %v2074_v4 = vmul.f32 0.0078125, %v2070_v1 }
 0xabf   : > { %v2078_v5 = vsub.f32 %v2074_v4, %v2076_v2  ;;  %v2107_v34 = vpop.permute.xlu1 %2106 }
 0xac0   : > { %v2068_v6 = vpop.xlane.xlu0 %2067 }
 0xac1   : > { %v2082_v8 = vadd.f32 1e-05, %v2078_v5  ;;  %v2073_v9 = vmul.f32 0.0078125, %v2068_v6 }
 0xac3   : > { %3789 = vrsqrt.f32 %v2082_v8  ;;  %v2077_v10 = vsub.f32 %v2073_v9, %v2075_v7  ;;  %v2310_v53 = vpop.permute.xlu1 %2309 }
 0xac5   : > { %v2081_v11 = vadd.f32 1e-05, %v2077_v10 }
 0xac7   : > { %3791 = vrsqrt.f32 %v2081_v11  ;;  %v2351_v62 = vpop.permute.xlu1 %2350 }
 0xac8   : > { %v2095_v22 = vpop.permute.xlu0 %2094 }
 0xacc   : > { %v2305_v30 = vpop.permute.xlu0 %2304 }
 0xacd   : > { %v3790_v13 = vpop.eup %3789 }
 0xace   : > { %v2086_v14 = vmul.f32 %v3790_v13, %v2080_v12 }
 0xad0   : > { %v2098_v25 = vmul.f32 %v2095_v22, %v2086_v14 }
 0xad1   : > { %v3792_v19 = vpop.eup %3791 }
 0xad2   : > { %v2085_v29 = vmul.f32 %v3792_v19, %v2079_v17  ;;  %v2110_v35 = vadd.f32 %v2107_v34, %v2098_v25 }
 0xad4   : > { %v2097_v31 = vmul.f32 %v2090_v61, %v2085_v29  ;;  %v3118_v61 = vld [vmem:[%s4547_s7 + $0x38] sm:$0xff] }
 0xad6   : > { %v2109_v36 = vadd.f32 %v2102_v16, %v2097_v31 }
 0xad8   : > { %v3642_v37 = vpack.c.bf16 %v2110_v35, %v2109_v36 }
 0xada   : > { %3643 = vmatprep.subr.bf16.mxu0 %v3642_v37 }
 0xadb   : > { %3645 = vmatpush3.bf16.msra.mxu0 %v3642_v37 }
 0xade   : > { %3451 = vmatmul.mubr.msk.f32.vlgmr.msra.gmra.mrb[10].mxu0 %vm1250_vm12, %v3104_v38 }
 0xadf   : > { %3453 = vmatprep.mubr.msk.f32.mxu0 %vm1250_vm12, %v3105_v39 }
 0xae2   : > { %3454 = vmatmul.mubr.msk.f32.gmra.mrb[12].mxu0 %vm1250_vm12, %v3106_v41  ;;  %v3121_v41 = vld [vmem:[%s4549_s9 + $0x30] sm:$0xff] }
 0xae3   : > { %3464 = vmatprep.mubr.msk.f32.mxu0 %vm705_vm2, %v3111_v15  ;;  %v3130_v15 = vld [vmem:[%s4550_s10 + $0x38] sm:$0xff]  ;;  %3479 = vmatprep.mubr.msk.f32.mxu1 %vm1092_vm5, %v3121_v41 }
 0xbb1   : > { %v3452_v44 = vpop.f32.mrb[10].mxu0 }
 0xbb2   : > { %v4331_v45 = vadd.f32 %v3452_v44, %v4031_v18  ;;  %v2194_v21 = vpop.f32.mrb[11].mxu0  ;;  %v3129_v44 = vld [vmem:[%s4550_s10 + $0x30] sm:$0xff] }
 0xbb3   : > { %v4334_v48 = vadd.f32 %v2194_v21, %v4033_v20  ;;  %v3112_v20 = vld [vmem:[%s4545_s5 + $0x38] sm:$0xff]  ;;  %v3131_v21 = vld [vmem:[%s4551_s11 + $0x30] sm:$0xff] }
 0xbb5   : > { %v3646_v49 = vpack.c.bf16 %v4331_v45, %v4334_v48  ;;  %v3455_v23 = vpop.f32.mrb[12].mxu0 }
 0xbb6   : > { %v4339_v50 = vadd.f32 %v3455_v23, %v4037_v27  ;;  %v2204_v51 = vpop.f32.mrb[13].mxu0 }
 0xbb7   : > { %v4342_v52 = vadd.f32 %v2204_v51, %v4039_v28  ;;  %3647 = vmatprep.subr.bf16.mxu0 %v3646_v49 }
 0xbb8   : > { %3649 = vmatpush3.bf16.msra.mxu0 %v3646_v49 }
 0xbb9   : > { %v3650_v18 = vpack.c.bf16 %v4339_v50, %v4342_v52 }
 0xbbb   : > { %3651 = vmatprep.subr.bf16.mxu0 %v3650_v18 }
 0xbbc   : > { %3653 = vmatpush3.bf16.msra.mxu0 %v3650_v18 }
 0xbbf   : > { %3465 = vmatmul.mubr.msk.f32.vlgmr.msra.gmra.mrb[14].mxu0 %vm705_vm2, %v3112_v20 }
 0xc92   : > { %v3466_v27 = vpop.f32.mrb[14].mxu0 }
 0xc93   : > { %vm2301_vm10 = vcmp.ge.f32.partialorder %v3466_v27, 0.0  ;;  %v2313_v54 = vmul.f32 %v3466_v27, %v2310_v53  ;;  %v2288_v28 = vpop.f32.mrb[15].mxu0 }
 0xc94   : > { %vm2300_vm11 = vcmp.ge.f32.partialorder %v2288_v28, 0.0  ;;  %v2312_v32 = vmul.f32 %v2305_v30, %v2288_v28 }
 0xc95   : > { %v2315_v55 = vsel %vm2301_vm10, %v3466_v27, %v2313_v54  ;;  %v3122_v54 = vld [vmem:[%s4549_s9 + $0x38] sm:$0xff] }
 0xc96   : > { %2324 = vadd.xlane.f32.xlu1 %v2315_v55  ;;  %v2314_v56 = vsel %vm2300_vm11, %v2288_v28, %v2312_v32  ;;  %v2327_v57 = vmul.f32 %v2315_v55, %v2315_v55 }
 0xc97   : > { %2322 = vadd.xlane.f32.xlu0 %v2314_v56  ;;  %v2326_v58 = vmul.f32 %v2314_v56, %v2314_v56 }
 0xc9b   : > { %2330 = vadd.xlane.f32.xlu0 %v2327_v57 }
 0xc9f   : > { %2328 = vadd.xlane.f32.xlu0 %v2326_v58 }
 0xca7   : > { %2362 = vperm.xlu1 %3712, %v3119_v59  }
 0xcab   : > { %2367 = vperm.xlu1 %3712, %v3120_v60  }
 0xcb5   : > { %2355 = vperm.xlu0 %3711, %v3118_v61   ;;  %v3133_v61 = vld [vmem:[%s4552_s12 + $0x30] sm:$0xff] }
 0xd23   : > { %v2325_v63 = vpop.xlane.xlu1 %2324 }
 0xd24   : > { %v2323_v0 = vpop.xlane.xlu0 %2322  ;;  %v2333_v1 = vmul.f32 0.0078125, %v2325_v63  ;;  %v2651_v63 = vld [vmem:[%s4555_s15 + $0x8] sm:$0xff] }
 0xd25   : > { %v2332_v4 = vmul.f32 0.0078125, %v2323_v0  ;;  %v2653_v0 = vld [vmem:[%s4555_s15 + $0x18] sm:$0xff] }
 0xd26   : > { %v2337_v3 = vmul.f32 %v2333_v1, %v2333_v1  ;;  %v2341_v13 = vsub.f32 %v2315_v55, %v2333_v1  ;;  %v3132_v1 = vld [vmem:[%s4551_s11 + $0x38] sm:$0xff] }
 0xd27   : > { %v2336_v8 = vmul.f32 %v2332_v4, %v2332_v4  ;;  %v2363_v17 = vpop.permute.xlu1 %2362  ;;  %v2340_v19 = vsub.f32 %v2314_v56, %v2332_v4  ;;  %v3155_v4 = vld [vmem:[%s4555_s15 + $0x38] sm:$0xff] }
 0xd28   : > { %v2331_v2 = vpop.xlane.xlu0 %2330 }
 0xd29   : > { %v2335_v5 = vmul.f32 0.0078125, %v2331_v2  ;;  %v3153_v2 = vld [vmem:[%s4555_s15 + $0x28] sm:$0xff] }
 0xd2b   : > { %v2339_v6 = vsub.f32 %v2335_v5, %v2337_v3  ;;  %v2368_v35 = vpop.permute.xlu1 %2367  ;;  %v2650_v3 = vld [vmem:[%s4555_s15] sm:$0xff]  ;;  %v2652_v5 = vld [vmem:[%s4555_s15 + $0x10] sm:$0xff] }
 0xd2c   : > { %v2329_v7 = vpop.xlane.xlu0 %2328 }
 0xd2d   : > { %v2343_v9 = vadd.f32 1e-05, %v2339_v6  ;;  %v2334_v10 = vmul.f32 0.0078125, %v2329_v7  ;;  %v3157_v6 = vld [vmem:[%s4555_s15 + $0x48] sm:$0x1] }
 0xd2e   : > { %v2654_v7 = vld [vmem:[%s4555_s15 + $0x20] sm:$0x1] }
 0xd2f   : > { %3793 = vrsqrt.f32 %v2343_v9  ;;  %v2338_v11 = vsub.f32 %v2334_v10, %v2336_v8  ;;  %v3154_v8 = vld [vmem:[%s4555_s15 + $0x30] sm:$0xff]  ;;  %v3156_v9 = vld [vmem:[%s4555_s15 + $0x40] sm:$0xff] }
 0xd30   : > { %v3135_v10 = vld [vmem:[%s4553_s13 + $0x60] sm:$0xff] }
 0xd31   : > { %v2342_v12 = vadd.f32 1e-05, %v2338_v11  ;;  %3486 = vmatprep.mubr.msk.f32.mxu0 %vm1250_vm12, %v3135_v10  ;;  %v3813_v11 = vmov 0.0|0.0   ;;  %v3150_v10 = vld [vmem:[%s4554_s14 + $0x38] sm:$0xff] }
 0xd33   : > { %3795 = vrsqrt.f32 %v2342_v12  ;;  %v3815_v12 = vmov 0.0  }
 0xd34   : > { %v2356_v25 = vpop.permute.xlu0 %2355 }
 0xd39   : > { %v3794_v14 = vpop.eup %3793 }
 0xd3a   : > { %v2347_v16 = vmul.f32 %v3794_v14, %v2341_v13 }
 0xd3c   : > { %v2359_v29 = vmul.f32 %v2356_v25, %v2347_v16 }
 0xd3d   : > { %v3796_v22 = vpop.eup %3795 }
 0xd3e   : > { %v2346_v31 = vmul.f32 %v3796_v22, %v2340_v19  ;;  %v2371_v36 = vadd.f32 %v2368_v35, %v2359_v29 }
 0xd40   : > { %v2358_v34 = vmul.f32 %v2351_v62, %v2346_v31  ;;  %v3134_v62 = vld [vmem:[%s4552_s12 + $0x38] sm:$0xff] }
 0xd42   : > { %v2370_v37 = vadd.f32 %v2363_v17, %v2358_v34 }
 0xd44   : > { %v3748_v38 = vpack.i.bf16 %v2371_v36, %v2370_v37  ;;  %v3666_v39 = vpack.c.bf16 %v2371_v36, %v2370_v37 }
 0xd46   : > { %3749 = vrot.lane.b32.xlu1 %v3748_v38, %s3811_s17  ;;  %3744 = vrot.lane.b32.xlu0 %v3748_v38, %s3812_s19 }
 0xd4a   : > { %2480 = vperm.xlu1 %3712, %v3130_v15   ;;  %2475 = vperm.xlu0 %3711, %v3129_v44  }
 0xd4e   : > { %2521 = vperm.xlu1 %3712, %v3131_v21  }
 0xdb8   : > { %v3750_v49 = vpop.permute.xlu1 %3749  ;;  %v3745_v23 = vpop.permute.xlu0 %3744 }
 0xdb9   : > { %v3752_v51 = vunpack.i.h.bf16 %v3750_v49  ;;  %v3751_v18 = vunpack.i.l.bf16 %v3750_v49  ;;  %v3747_v20 = vunpack.i.h.bf16 %v3745_v23  ;;  %v3746_v53 = vunpack.i.l.bf16 %v3745_v23 }
 0xdbb   : > { %v3654_v27 = vpack.c.bf16 %v3747_v20, %v3746_v53  ;;  %v3660_v30 = vpack.c.bf16 %v3752_v51, %v3751_v18 }
 0xdbd   : > { %3656 = vmatprep.subr.msk.bf16.mxu1 %vm4189_vm0, %v3654_v27 }
 0xdbe   : > { %3659 = vmatpush3.bf16.msk.msra.mxu1 %vm4189_vm0, %v3654_v27 }
 0xdbf   : > { %3662 = vmatprep.subr.msk.bf16.mxu1 %vm4075_vm8, %v3660_v30 }
 0xdc2   : > { %3665 = vmatpush3.bf16.msk.msra.mxu1 %vm4075_vm8, %v3660_v30 }
 0xdc3   : > { %3667 = vmatprep.subr.bf16.mxu1 %v3666_v39 }
 0xdc6   : > { %3669 = vmatpush3.bf16.msra.mxu1 %v3666_v39 }
 0xdc7   : > { %3680 = vmatprep.subr.bf16.mxu1 %v3813_v11 }
 0xdc9   : > { %3480 = vmatmul.mubr.msk.f32.vlgmr.msra.gmra.mrb[18].mxu1 %vm1092_vm5, %v3122_v54  ;;  %v2481_v28 = vpop.permute.xlu1 %2480  ;;  %v2476_v55 = vpop.permute.xlu0 %2475  ;;  %vm3814_vm5 = vmmov 0  }
 0xdca   : > { %3523 = vmatprep.mubr.msk.f32.mxu1 %vm3814_vm5, %v3815_v12 }
 0xdcd   : > { %v2522_v13 = vpop.permute.xlu1 %2521 }
 0xe9c   : > { %v3481_v32 = vpop.f32.mrb[18].mxu1 }
 0xe9d   : > { %vm2472_vm13 = vcmp.ge.f32.partialorder %v3481_v32, 0.0  ;;  %v2484_v40 = vmul.f32 %v3481_v32, %v2481_v28  ;;  %v2459_v56 = vpop.f32.mrb[19].mxu1 }
 0xe9e   : > { %vm2471_vm14 = vcmp.ge.f32.partialorder %v2459_v56, 0.0  ;;  %v2483_v57 = vmul.f32 %v2476_v55, %v2459_v56  ;;  %v3137_v55 = vld [vmem:[%s4553_s13 + $0x70] sm:$0xff] }
 0xe9f   : > { %v2486_v58 = vsel %vm2472_vm13, %v3481_v32, %v2484_v40  ;;  %v3136_v32 = vld [vmem:[%s4553_s13 + $0x68] sm:$0xff]  ;;  %v3138_v40 = vld [vmem:[%s4553_s13 + $0x78] sm:$0xff] }
 0xea0   : > { %2495 = vadd.xlane.f32.xlu1 %v2486_v58  ;;  %v4386_v24 = vsel %vm2471_vm14, %v2459_v56, %v2483_v57  ;;  %v2498_v59 = vmul.f32 %v2486_v58, %v2486_v58 }
 0xea1   : > { %2493 = vadd.xlane.f32.xlu0 %v4386_v24  ;;  %v2497_v60 = vmul.f32 %v4386_v24, %v4386_v24 }
 0xea5   : > { %2501 = vadd.xlane.f32.xlu0 %v2498_v59 }
 0xea9   : > { %2499 = vadd.xlane.f32.xlu0 %v2497_v60 }
 0xeb1   : > { %2533 = vperm.xlu1 %3712, %v3133_v61  }
 0xeb5   : > { %2538 = vperm.xlu1 %3712, %v3134_v62  }
 0xeb9   : > { %2662 = vperm.xlu1 %3712, %v2651_v63  }
 0xebd   : > { %2672 = vperm.xlu1 %3712, %v2653_v0  }
 0xebf   : > { %2526 = vperm.xlu0 %3711, %v3132_v1  }
 0xec1   : > { %2804 = vperm.xlu1 %3712, %v3153_v2  }
 0xec3   : > { %2657 = vperm.xlu0 %3711, %v2650_v3  }
 0xec5   : > { %2814 = vperm.xlu1 %3712, %v3155_v4  }
 0xec7   : > { %2667 = vperm.xlu0 %3711, %v2652_v5   ;;  %v3149_v5 = vld [vmem:[%s4554_s14 + $0x30] sm:$0xff] }
 0xec9   : > { %2824 = vperm.xlu1 %3712, %v3157_v6  }
 0xecb   : > { %2677 = vperm.xlu0 %3711, %v2654_v7  }
 0xecf   : > { %2809 = vperm.xlu0 %3711, %v3154_v8  }
 0xed3   : > { %2819 = vperm.xlu0 %3711, %v3156_v9  }
 0xf2d   : > { %v2496_v14 = vpop.xlane.xlu1 %2495 }
 0xf2e   : > { %v2494_v16 = vpop.xlane.xlu0 %2493  ;;  %v2504_v17 = vmul.f32 0.0078125, %v2496_v14 }
 0xf2f   : > { %v2503_v25 = vmul.f32 0.0078125, %v2494_v16 }
 0xf30   : > { %v2508_v22 = vmul.f32 %v2504_v17, %v2504_v17  ;;  %v2512_v41 = vsub.f32 %v2486_v58, %v2504_v17  ;;  %v3151_v17 = vld [vmem:[%s4554_s14 + $0x40] sm:$0xff] }
 0xf31   : > { %v2507_v35 = vmul.f32 %v2503_v25, %v2503_v25  ;;  %v2534_v21 = vpop.permute.xlu1 %2533  ;;  %v2511_v49 = vsub.f32 %v4386_v24, %v2503_v25 }
 0xf32   : > { %v2502_v19 = vpop.xlane.xlu0 %2501 }
 0xf33   : > { %v2506_v29 = vmul.f32 0.0078125, %v2502_v19 }
 0xf35   : > { %v2510_v31 = vsub.f32 %v2506_v29, %v2508_v22  ;;  %v2539_v27 = vpop.permute.xlu1 %2538 }
 0xf36   : > { %v2500_v34 = vpop.xlane.xlu0 %2499 }
 0xf37   : > { %v2514_v36 = vadd.f32 1e-05, %v2510_v31  ;;  %v2505_v37 = vmul.f32 0.0078125, %v2500_v34  ;;  %v3152_v31 = vld [vmem:[%s4554_s14 + $0x48] sm:$0x1] }
 0xf39   : > { %3797 = vrsqrt.f32 %v2514_v36  ;;  %v2509_v38 = vsub.f32 %v2505_v37, %v2507_v35 }
 0xf3b   : > { %v2513_v39 = vadd.f32 1e-05, %v2509_v38 }
 0xf3d   : > { %3799 = vrsqrt.f32 %v2513_v39 }
 0xf3e   : > { %v2527_v51 = vpop.permute.xlu0 %2526 }
 0xf42   : > { %v2658_v63 = vpop.permute.xlu0 %2657 }
 0xf43   : > { %v3798_v15 = vpop.eup %3797 }
 0xf44   : > { %v2518_v44 = vmul.f32 %v3798_v15, %v2512_v41 }
 0xf46   : > { %v2530_v18 = vmul.f32 %v2527_v51, %v2518_v44  ;;  %v2668_v6 = vpop.permute.xlu0 %2667 }
 0xf47   : > { %v3800_v23 = vpop.eup %3799 }
 0xf48   : > { %v2517_v20 = vmul.f32 %v3800_v23, %v2511_v49  ;;  %v2542_v30 = vadd.f32 %v2539_v27, %v2530_v18 }
 0xf4a   : > { %v2529_v53 = vmul.f32 %v2522_v13, %v2517_v20  ;;  %v2678_v19 = vpop.permute.xlu0 %2677 }
 0xf4c   : > { %v2541_v54 = vadd.f32 %v2534_v21, %v2529_v53 }
 0xf4e   : > { %v3670_v28 = vpack.c.bf16 %v2542_v30, %v2541_v54  ;;  %v2810_v38 = vpop.permute.xlu0 %2809 }
 0xf50   : > { %3671 = vmatprep.subr.bf16.mxu0 %v3670_v28 }
 0xf51   : > { %3673 = vmatpush3.bf16.msra.mxu0 %v3670_v28 }
 0xf52   : > { %3674 = vmatprep.subr.bf16.mxu0 %v3813_v11  ;;  %v2820_v23 = vpop.permute.xlu0 %2819 }
 0xf54   : > { %3487 = vmatmul.mubr.msk.f32.vlgmr.msra.gmra.mrb[16].mxu0 %vm1250_vm12, %v3136_v32 }
 0xf55   : > { %3676 = vmatpush3.bf16.msra.mxu0 %v3675_v43  ;;  %3489 = vmatprep.mubr.msk.f32.mxu0 %vm1250_vm12, %v3137_v55  ;;  %v2647_v43 = vld [vmem:[%s4554_s14 + $0x10] sm:$0xff] }
 0xf56   : > { %3677 = vmatprep.subr.bf16.mxu0 %v3813_v11 }
 0xf58   : > { %3490 = vmatmul.mubr.msk.f32.gmra.mrb[18].mxu0 %vm1250_vm12, %v3138_v40 }
 0xf59   : > { %3679 = vmatpush3.bf16.msra.mxu0 %v3678_v47  ;;  %3500 = vmatprep.mubr.msk.f32.mxu0 %vm3814_vm5, %v3815_v12 }
 0xf5c   : > { %3501 = vmatmul.mubr.msk.f32.vlgmr.msra.gmra.mrb[20].mxu0 %vm705_vm2, %v2645_v42 }
 0xf5d   : > { %3503 = vmatprep.mubr.msk.f32.mxu0 %vm3814_vm5, %v3815_v12 }
 0xf60   : > { %3504 = vmatmul.mubr.msk.f32.gmra.mrb[22].mxu0 %vm705_vm2, %v2646_v26 }
 0xf61   : > { %3506 = vmatprep.mubr.msk.f32.mxu0 %vm3814_vm5, %v3815_v12 }
 0xf64   : > { %3507 = vmatmul.mubr.msk.f32.gmra.mrb[24].mxu0 %vm705_vm2, %v2647_v43 }
 0xf65   : > { %3509 = vmatprep.mubr.msk.f32.mxu0 %vm3814_vm5, %v3815_v12 }
 0xf68   : > { %3510 = vmatmul.mubr.msk.f32.gmra.mrb[26].mxu0 %vm705_vm2, %v2648_v33 }
 0xf69   : > { %3512 = vmatprep.mubr.msk.f32.mxu0 %vm3814_vm5, %v3815_v12 }
 0xf6c   : > { %3513 = vmatmul.mubr.msk.f32.gmra.mrb[28].mxu0 %vm705_vm2, %v2649_v46 }
0x1027   : > { %v3488_v47 = vpop.f32.mrb[16].mxu0 }
0x1028   : > { %v2632_v56 = vadd.f32 %v3488_v47, %v4331_v45  ;;  %v2626_v57 = vpop.f32.mrb[17].mxu0 }
0x1029   : > { %v2627_v58 = vadd.f32 %v2626_v57, %v4334_v48 }
0x102b   : > { %v3681_v24 = vpack.c.bf16 %v2632_v56, %v2627_v58  ;;  %v3491_v59 = vpop.f32.mrb[18].mxu0 }
0x102c   : > { %v2642_v60 = vadd.f32 %v3491_v59, %v4339_v50  ;;  %v2636_v61 = vpop.f32.mrb[19].mxu0  ;;  %v3148_v50 = vld [vmem:[%s4554_s14 + $0x28] sm:$0xff] }
0x102d   : > { %v2637_v62 = vadd.f32 %v2636_v61, %v4342_v52  ;;  %3682 = vmatpush3.bf16.msra.mxu1 %v3681_v24  ;;  %v2663_v52 = vpop.permute.xlu1 %2662 }
0x102e   : > { %3683 = vmatprep.subr.bf16.mxu1 %v3813_v11 }
0x102f   : > { %v3684_v0 = vpack.c.bf16 %v2642_v60, %v2637_v62  ;;  %v2761_v45 = vpop.f32.mrb[20].mxu0 }
0x1030   : > { %v2762_v48 = vadd.f32 %v2761_v45, %v2658_v63  ;;  %v3502_v1 = vpop.f32.mrb[21].mxu0 }
0x1031   : > { %3685 = vmatpush3.bf16.msra.mxu1 %v3684_v0  ;;  %v2673_v11 = vpop.permute.xlu1 %2672 }
0x1032   : > { %2785 = vst [vmem:[%s4497_s29] sm:$0xff] %v2762_v48 }
0x1033   : > { %v2766_v2 = vpop.f32.mrb[22].mxu0 }
0x1034   : > { %v2767_v3 = vadd.f32 %v2766_v2, %v2663_v52  ;;  %3524 = vmatmul.mubr.msk.f32.vlgmr.msra.gmra.mrb[20].mxu1 %vm705_vm2, %v3148_v50  ;;  %v3505_v4 = vpop.f32.mrb[23].mxu0 }
0x1035   : > { %3526 = vmatprep.mubr.msk.f32.mxu1 %vm3814_vm5, %v3815_v12  ;;  %v2805_v34 = vpop.permute.xlu1 %2804 }
0x1036   : > { %2786 = vst [vmem:[%s4497_s29 + $0x8] sm:$0xff] %v2767_v3 }
0x1037   : > { %v2771_v7 = vpop.f32.mrb[24].mxu0 }
0x1038   : > { %v2772_v8 = vadd.f32 %v2771_v7, %v2668_v6  ;;  %3527 = vmatmul.mubr.msk.f32.gmra.mrb[22].mxu1 %vm705_vm2, %v3149_v5  ;;  %v3508_v9 = vpop.f32.mrb[25].mxu0 }
0x1039   : > { %3529 = vmatprep.mubr.msk.f32.mxu1 %vm3814_vm5, %v3815_v12 }
0x103a   : > { %2787 = vst [vmem:[%s4497_s29 + $0x10] sm:$0xff] %v2772_v8 }
0x103b   : > { %v2776_v13 = vpop.f32.mrb[26].mxu0 }
0x103c   : > { %v2777_v14 = vadd.f32 %v2776_v13, %v2673_v11  ;;  %3530 = vmatmul.mubr.msk.f32.gmra.mrb[24].mxu1 %vm705_vm2, %v3150_v10  ;;  %v3511_v16 = vpop.f32.mrb[27].mxu0 }
0x103d   : > { %3532 = vmatprep.mubr.msk.f32.mxu1 %vm3814_vm5, %v3815_v12 }
0x103e   : > { %2788 = vst [vmem:[%s4497_s29 + $0x18] sm:$0xff] %v2777_v14 }
0x103f   : > { %v2781_v22 = vpop.f32.mrb[28].mxu0 }
0x1040   : > { %v2782_v25 = vadd.f32 %v2781_v22, %v2678_v19  ;;  %3533 = vmatmul.mubr.msk.f32.gmra.mrb[26].mxu1 %vm705_vm2, %v3151_v17  ;;  %v3514_v29 = vpop.f32.mrb[29].mxu0 }
0x1041   : > { %3535 = vmatprep.mubr.msk.f32.mxu1 %vm3814_vm5, %v3815_v12  ;;  %v2815_v12 = vpop.permute.xlu1 %2814 }
0x1042   : > { %2789 = vst [vmem:[%s4497_s29 + $0x20] sm:$0x1] %v2782_v25 }
0x1044   : > { %3536 = vmatmul.mubr.msk.f32.gmra.mrb[28].mxu1 %vm705_vm2, %v3152_v31 }
0x1045   : > { %v2825_v53 = vpop.permute.xlu1 %2824 }
0x1107   : > { %v2908_v35 = vpop.f32.mrb[20].mxu1 }
0x1108   : > { %v2909_v36 = vadd.f32 %v2908_v35, %v2805_v34  ;;  %v3525_v37 = vpop.f32.mrb[21].mxu1 }
0x110a   : > { %3163 = vst [vmem:[%s4497_s29 + $0x28] sm:$0xff] %v2909_v36 }
0x110b   : > { %v2913_v39 = vpop.f32.mrb[22].mxu1 }
0x110c   : > { %v2914_v41 = vadd.f32 %v2913_v39, %v2810_v38  ;;  %v3528_v15 = vpop.f32.mrb[23].mxu1 }
0x110e   : > { %3164 = vst [vmem:[%s4497_s29 + $0x30] sm:$0xff] %v2914_v41 }
0x110f   : > { %v2918_v44 = vpop.f32.mrb[24].mxu1 }
0x1110   : > { %v2919_v21 = vadd.f32 %v2918_v44, %v2815_v12  ;;  %v3531_v49 = vpop.f32.mrb[25].mxu1 }
0x1112   : > { %3165 = vst [vmem:[%s4497_s29 + $0x38] sm:$0xff] %v2919_v21 }
0x1113   : > { %v2923_v51 = vpop.f32.mrb[26].mxu1 }
0x1114   : > { %v2924_v18 = vadd.f32 %v2923_v51, %v2820_v23  ;;  %v3534_v20 = vpop.f32.mrb[27].mxu1 }
0x1116   : > { %3166 = vst [vmem:[%s4497_s29 + $0x40] sm:$0xff] %v2924_v18 }
0x1117   : > { %v2928_v27 = vpop.f32.mrb[28].mxu1 }
0x1118   : > { %v2929_v30 = vadd.f32 %v2928_v27, %v2825_v53  ;;  %v3537_v54 = vpop.f32.mrb[29].mxu1 }
0x111a   : > { %3167 = vst [vmem:[%s4497_s29 + $0x48] sm:$0x1] %v2929_v30 }
0x111b PF: > { %s26_s21 = sadd.s32 1, %s3807_s21  }
0x111c   : > { %p23_p4 = scmp.ge.s32.totalorder %s26_s21, 4  }
0x111e   :  { %25 = sbr.rel (!%p23_p4) target bundleno = 2 (0x2), region = 147 }

</bundles_post_ra>
